<compile_context>
chip_gen: v6e
topology: v6e:2x2x1
jax: 0.10.0
libtpu: 0.0.40
codegen_flags: <defaults>
</compile_context>

<pallas_src>
import jax
import jax.numpy as jnp
from jax.experimental import pallas as pl
from jax.experimental.pallas import tpu as pltpu


def _round_up(x, m):
    return ((x + m - 1) // m) * m


def _pick_time_chunk(S, BB, Op, Hp, itemsize, budget_bytes):
    """Largest time-chunk (<=32 steps) whose streamed x/out blocks (double-buffered)
    plus per-chunk xproj/hs scratches fit the per-generation VMEM budget."""
    per_t = BB * (2 * Op * itemsize        # x chunk, double-buffered
                  + 2 * Op * 4             # out chunk (f32), double-buffered
                  + 3 * Hp * itemsize      # xproj scratch
                  + Hp * itemsize)         # hs scratch
    T = int(max(1, min(32, budget_bytes // max(per_t, 1))))
    return min(T, S)


def _make_kernel(S, T, BB, Hp, Op, io_dtype, needs_mask, unroll):
    def kernel(x_ref, h0_ref, wi_ref, wh_ref, bfi_ref, bhn_ref,
               wout_ref, bout_ref, out_ref, hn_ref,
               h_scr, xproj_scr, hs_scr):
        c = pl.program_id(1)            # time-chunk index (sequential, "arbitrary")

        @pl.when(c == 0)
        def _init():                    # fresh hidden state per batch block
            h_scr[...] = h0_ref[...]

        # ---- Hoisted fused input projection for this chunk (no serial dependence):
        # (T*BB, Op) @ (Op, 3Hp) + (b_i{r,z,n} with b_hr/b_hz folded in).
        x2 = x_ref[...].reshape(T * BB, Op)
        xg = (jnp.dot(x2, wi_ref[...], preferred_element_type=jnp.float32)
              + bfi_ref[...])
        xproj_scr[...] = xg.reshape(T, BB, 3 * Hp).astype(io_dtype)

        # b_hn broadcast once per chunk, closed over by the loop body.
        bhn = jnp.broadcast_to(bhn_ref[...], (BB, Hp))
        wh = wh_ref[...]

        # ---- Sequential GRU recurrence: h carried in registers (fori_loop carry).
        def step(t, h):
            gx = xproj_scr[t].astype(jnp.float32)                       # (BB, 3Hp)
            gh = jnp.dot(h.astype(wh.dtype), wh,
                         preferred_element_type=jnp.float32)            # (BB, 3Hp)
            # PyTorch GRU cell, gate order [r | z | n]:
            r = jax.nn.sigmoid(gx[:, :Hp] + gh[:, :Hp])
            z = jax.nn.sigmoid(gx[:, Hp:2 * Hp] + gh[:, Hp:2 * Hp])
            n = jnp.tanh(gx[:, 2 * Hp:] + r * (gh[:, 2 * Hp:] + bhn))
            h_new = n + z * (h - n)                                     # == (1-z)*n + z*h
            if needs_mask:  # only traced if the sequence was padded to a chunk multiple
                h_new = jnp.where(c * T + t < S, h_new, h)
            hs_scr[t] = h_new.astype(io_dtype)
            return h_new

        h_last = jax.lax.fori_loop(0, T, step, h_scr[...], unroll=unroll)
        h_scr[...] = h_last             # carry to next chunk
        hn_ref[...] = h_last            # resident output block; last chunk's write survives

        # ---- Hoisted hid2out projection for the chunk: one (T*BB, Hp) @ (Hp, Op) matmul
        # and a single contiguous lane-dense writeback.
        hs2 = hs_scr[...].reshape(T * BB, Hp)
        out = (jnp.dot(hs2, wout_ref[...], preferred_element_type=jnp.float32)
               + bout_ref[...])
        out_ref[...] = out.reshape(T, BB, Op)

    return kernel


def _prepare_params(params, O, H, Op, Hp, dtype):
    """Pad gate blocks to lane-aligned Hp/Op, fold b_hr/b_hz into the input-projection bias,
    keep b_hn separate, and cast MXU operands to `dtype` (biases stay f32)."""
    def pad_gate_cols(w, Rp):
        out = jnp.zeros((Rp, 3 * Hp), jnp.float32)
        for g in range(3):
            out = out.at[: w.shape[0], g * Hp: g * Hp + H].set(w[:, g * H:(g + 1) * H])
        return out

    wi_p = pad_gate_cols(params["wi"], Op).astype(dtype)
    wh_p = pad_gate_cols(params["wh"], Hp).astype(dtype)

    bi = params["bi"][0]
    bh = params["bh"][0]
    extras = (bh[0:H], bh[H:2 * H], jnp.zeros((H,), jnp.float32))
    bfi = jnp.zeros((1, 3 * Hp), jnp.float32)
    for g in range(3):
        bfi = bfi.at[0, g * Hp: g * Hp + H].set(bi[g * H:(g + 1) * H] + extras[g])
    bhn = jnp.zeros((1, Hp), jnp.float32).at[0, :H].set(bh[2 * H:3 * H])

    wout_p = jnp.zeros((Hp, Op), jnp.float32).at[:H, :O].set(params["wout"]).astype(dtype)
    bout_p = jnp.zeros((1, Op), jnp.float32).at[0, :O].set(params["bout"][0])
    return wi_p, wh_p, bfi, bhn, wout_p, bout_p


def decoder_rnn_board_forward(x, h0, params, *, dtype=jnp.float32):
    """Pallas forward pass matching DecoderRNNBoard(output_size, hidden_size).forward.

    x: (S, B, O) f32, h0: (1, B, H) f32.  `dtype` controls the MXU-operand /
    streamed-activation dtype (f32 or bf16); gate math, the h carry and all
    accumulation stay in f32.
    """
    S, B, O = x.shape
    H = h0.shape[-1]

    # Lane-align hidden/output dims (unmasked stores, aligned gate slices).
    Hp = _round_up(max(H, 1), 128)
    Op = _round_up(max(O, 1), 128)

    # Batch: pad to sublane tiles; split into 2 blocks when big enough so the leading
    # "parallel" grid axis can be sharded across v7x's two TensorCores.
    if B >= 16:
        Bp = _round_up(B, 16)
        BB = Bp // 2
    else:
        Bp = _round_up(max(B, 1), 8)
        BB = Bp
    n_bblk = Bp // BB

    itemsize = jnp.dtype(dtype).itemsize
    try:
        vmem_cap = int(getattr(pltpu.get_tpu_info(), "vmem_capacity_bytes", 64 * 2 ** 20))
    except Exception:
        vmem_cap = 64 * 2 ** 20           # conservative (v7x per-TC)
    T = _pick_time_chunk(S, BB, Op, Hp, itemsize, vmem_cap // 4)
    Sp = _round_up(S, T)
    n_chunks = Sp // T
    needs_mask = (Sp != S)                # mask h-updates of padded tail timesteps
    unroll = min(T, 8)                    # cap unroll (instr memory / vreg pressure)

    wi_p, wh_p, bfi_p, bhn_p, wout_p, bout_p = _prepare_params(params, O, H, Op, Hp, dtype)

    xp = jnp.zeros((Sp, Bp, Op), dtype).at[:S, :B, :O].set(x.astype(dtype))
    h0p = jnp.zeros((Bp, Hp), jnp.float32).at[:B, :H].set(h0[0])

    # Working-set estimate -> explicit scoped-VMEM limit.
    est = (
        (wi_p.size + wh_p.size + wout_p.size) * itemsize
        + (bfi_p.size + bhn_p.size + bout_p.size) * 4
        + 2 * T * BB * Op * itemsize      # x chunk (double-buffered)
        + 2 * T * BB * Op * 4             # out chunk (double-buffered)
        + 4 * BB * Hp * 4                 # h0 / hn blocks
        + T * BB * (3 * Hp + Hp) * itemsize
        + BB * Hp * 4                     # h carry scratch
    )
    vmem_limit = int(min(100 * 2 ** 20, max(24 * 2 ** 20, 2 * est)))

    kernel = _make_kernel(S, T, BB, Hp, Op, dtype, needs_mask, unroll)

    full = lambda a: pl.BlockSpec(a.shape, lambda b, c: (0,) * a.ndim)   # resident weights
    grid_spec = pltpu.PrefetchScalarGridSpec(
        num_scalar_prefetch=0,
        grid=(n_bblk, n_chunks),
        in_specs=[
            pl.BlockSpec((T, BB, Op), lambda b, c: (c, b, 0)),   # x chunk (streamed)
            pl.BlockSpec((BB, Hp), lambda b, c: (b, 0)),         # h0 (per batch block)
            full(wi_p), full(wh_p), full(bfi_p), full(bhn_p),
            full(wout_p), full(bout_p),
        ],
        out_specs=(
            pl.BlockSpec((T, BB, Op), lambda b, c: (c, b, 0)),   # out chunk (streamed)
            pl.BlockSpec((BB, Hp), lambda b, c: (b, 0)),         # hn (resident over chunks)
        ),
        scratch_shapes=[
            pltpu.VMEM((BB, Hp), jnp.float32),        # hidden carry across chunks
            pltpu.VMEM((T, BB, 3 * Hp), dtype),       # per-chunk input projections
            pltpu.VMEM((T, BB, Hp), dtype),           # per-chunk hidden states
        ],
    )

    out, hn = pl.pallas_call(
        kernel,
        out_shape=(
            jax.ShapeDtypeStruct((Sp, Bp, Op), jnp.float32),
            jax.ShapeDtypeStruct((Bp, Hp), jnp.float32),
        ),
        grid_spec=grid_spec,
        compiler_params=pltpu.CompilerParams(
            dimension_semantics=("parallel", "arbitrary"),
            vmem_limit_bytes=vmem_limit,
        ),
    )(xp, h0p, wi_p, wh_p, bfi_p, bhn_p, wout_p, bout_p)

    return out[:S, :B, :O], hn[None, :B, :H]


def init_params(key, output_size, hidden_size):
    """Deterministic init mirroring nn.GRU / nn.Linear shapes, stored fused + pre-transposed.
    Gate order inside the fused 3H axis is [r | z | n] (PyTorch convention)."""
    O, H = output_size, hidden_size
    k = 1.0 / jnp.sqrt(jnp.float32(H))
    keys = jax.random.split(key, 6)
    u = lambda kk, shape: jax.random.uniform(kk, shape, jnp.float32, -k, k)
    return {
        "wi": u(keys[0], (O, 3 * H)),    # fused W_i{r,z,n}^T
        "wh": u(keys[1], (H, 3 * H)),    # fused W_h{r,z,n}^T
        "bi": u(keys[2], (1, 3 * H)),    # fused b_i{r,z,n}
        "bh": u(keys[3], (1, 3 * H)),    # fused b_h{r,z,n}
        "wout": u(keys[4], (H, O)),      # hid2out W^T
        "bout": u(keys[5], (1, O)),      # hid2out bias
    }


def reference_forward(x, h0, p):
    """Pure-JAX reference of the PyTorch module for a correctness check."""
    H = h0.shape[-1]

    def step(h, xt):
        gx = xt @ p["wi"] + p["bi"]
        gh = h @ p["wh"] + p["bh"]
        r = jax.nn.sigmoid(gx[:, 0:H] + gh[:, 0:H])
        z = jax.nn.sigmoid(gx[:, H:2 * H] + gh[:, H:2 * H])
        n = jnp.tanh(gx[:, 2 * H:3 * H] + r * gh[:, 2 * H:3 * H])
        h_new = (1.0 - z) * n + z * h
        return h_new, h_new

    hT, hs = jax.lax.scan(step, h0[0], x)
    out = hs @ p["wout"] + p["bout"]
    return out, hT[None]


if __name__ == "__main__":
    SEQ, BATCH = 8, 4
    OUTPUT_SIZE, HIDDEN_SIZE = 16, 32

    root = jax.random.PRNGKey(0)
    k_params, k_x, k_h = jax.random.split(root, 3)

    params = init_params(k_params, OUTPUT_SIZE, HIDDEN_SIZE)
    x = jax.random.normal(k_x, (SEQ, BATCH, OUTPUT_SIZE), jnp.float32)
    h0 = jax.random.normal(k_h, (1, BATCH, HIDDEN_SIZE), jnp.float32)

    ref_out, ref_hn = reference_forward(x, h0, params)

    # f32 path: tight check against the f32 reference.
    out, hn = decoder_rnn_board_forward(x, h0, params)
    out = jax.block_until_ready(out)
    hn = jax.block_until_ready(hn)
    assert out.shape == (SEQ, BATCH, OUTPUT_SIZE)
    assert hn.shape == (1, BATCH, HIDDEN_SIZE)
    assert jnp.max(jnp.abs(out - ref_out)) < 1e-4
    assert jnp.max(jnp.abs(hn - ref_hn)) < 1e-4

    # bf16 weights/activations (f32 accumulation + f32 gate math): loose check.
    out_bf, hn_bf = decoder_rnn_board_forward(x, h0, params, dtype=jnp.bfloat16)
    out_bf = jax.block_until_ready(out_bf)
    hn_bf = jax.block_until_ready(hn_bf)
    assert jnp.max(jnp.abs(out_bf - ref_out)) < 5e-2
    assert jnp.max(jnp.abs(hn_bf - ref_hn)) < 5e-2

    print("KERNEL_OK")
</pallas_src>

<mosaic_0001>
module attributes {stable_mosaic.version = 11 : i64} {
  func.func @kernel(%arg0: i32, %arg1: i32, %arg2: memref<8x8x128xf32, #tpu.memory_space<vmem>>, %arg3: memref<8x128xf32, #tpu.memory_space<vmem>>, %arg4: memref<128x384xf32, #tpu.memory_space<vmem>>, %arg5: memref<128x384xf32, #tpu.memory_space<vmem>>, %arg6: memref<1x384xf32, #tpu.memory_space<vmem>>, %arg7: memref<1x128xf32, #tpu.memory_space<vmem>>, %arg8: memref<128x128xf32, #tpu.memory_space<vmem>>, %arg9: memref<1x128xf32, #tpu.memory_space<vmem>>, %arg10: memref<8x8x128xf32, #tpu.memory_space<vmem>>, %arg11: memref<8x128xf32, #tpu.memory_space<vmem>>, %arg12: memref<8x128xf32, #tpu.memory_space<vmem>>, %arg13: memref<8x8x384xf32, #tpu.memory_space<vmem>>, %arg14: memref<8x8x128xf32, #tpu.memory_space<vmem>>) attributes {dimension_semantics = [#tpu.dimension_semantics<parallel>, #tpu.dimension_semantics<arbitrary>], iteration_bounds = array<i64: 1, 1>, scalar_prefetch = 0 : i64, scratch_operands = 3 : i64, tpu.core_type = #tpu.core_type<tc>, window_params = [{transform_indices = @transform_0, window_bounds = array<i64: 8, 8, 128>}, {transform_indices = @transform_1, window_bounds = array<i64: 8, 128>}, {pipeline_mode = #tpu.pipeline_mode<synchronous>, transform_indices = @transform_2, window_bounds = array<i64: 128, 384>}, {pipeline_mode = #tpu.pipeline_mode<synchronous>, transform_indices = @transform_3, window_bounds = array<i64: 128, 384>}, {pipeline_mode = #tpu.pipeline_mode<synchronous>, transform_indices = @transform_4, window_bounds = array<i64: 1, 384>}, {pipeline_mode = #tpu.pipeline_mode<synchronous>, transform_indices = @transform_5, window_bounds = array<i64: 1, 128>}, {pipeline_mode = #tpu.pipeline_mode<synchronous>, transform_indices = @transform_6, window_bounds = array<i64: 128, 128>}, {pipeline_mode = #tpu.pipeline_mode<synchronous>, transform_indices = @transform_7, window_bounds = array<i64: 1, 128>}, {transform_indices = @transform_8, window_bounds = array<i64: 8, 8, 128>}, {transform_indices = @transform_9, window_bounds = array<i64: 8, 128>}]} {
    %c0_i32 = arith.constant 0 : i32
    %0 = arith.cmpi eq, %arg1, %c0_i32 : i32
    %1 = arith.extui %0 : i1 to i32
    %c0_i32_0 = arith.constant 0 : i32
    %2 = arith.cmpi ne, %1, %c0_i32_0 : i32
    scf.if %2 {
      %c0_88 = arith.constant 0 : index
      %c0_89 = arith.constant 0 : index
      %292 = vector.load %arg3[%c0_88, %c0_89] : memref<8x128xf32, #tpu.memory_space<vmem>>, vector<8x128xf32>
      %c0_90 = arith.constant 0 : index
      %c0_91 = arith.constant 0 : index
      %293 = vector.load %arg12[%c0_90, %c0_91] : memref<8x128xf32, #tpu.memory_space<vmem>>, vector<8x128xf32>
      tpu.vector_store %arg12[%c0_90, %c0_91], %292 {strides = array<i32>} : memref<8x128xf32, #tpu.memory_space<vmem>>, vector<8x128xf32>,
    } else {
    }
    %c0 = arith.constant 0 : index
    %c0_1 = arith.constant 0 : index
    %c0_2 = arith.constant 0 : index
    %3 = vector.load %arg2[%c0, %c0_1, %c0_2] : memref<8x8x128xf32, #tpu.memory_space<vmem>>, vector<8x8x128xf32>
    %4 = vector.shape_cast %3 : vector<8x8x128xf32> to vector<64x128xf32>
    %c0_3 = arith.constant 0 : index
    %c0_4 = arith.constant 0 : index
    %5 = vector.load %arg4[%c0_3, %c0_4] : memref<128x384xf32, #tpu.memory_space<vmem>>, vector<128x384xf32>
    %cst = arith.constant dense<0.000000e+00> : vector<64x384xf32>
    %6 = tpu.matmul %4, %5, %cst {dimension_numbers = #tpu.dot_dimension_numbers<[1], [0], [0], [1], [0, 0, 1, 1], [], []>} : vector<64x128xf32>, vector<128x384xf32>, vector<64x384xf32> -> vector<64x384xf32>
    %c0_5 = arith.constant 0 : index
    %c0_6 = arith.constant 0 : index
    %7 = vector.load %arg6[%c0_5, %c0_6] : memref<1x384xf32, #tpu.memory_space<vmem>>, vector<1x384xf32>
    %8 = vector.broadcast %7 : vector<1x384xf32> to vector<64x384xf32>
    %9 = arith.addf %6, %8 : vector<64x384xf32>
    %10 = vector.shape_cast %9 : vector<64x384xf32> to vector<8x8x384xf32>
    %c0_7 = arith.constant 0 : index
    %c0_8 = arith.constant 0 : index
    %c0_9 = arith.constant 0 : index
    %11 = vector.load %arg13[%c0_7, %c0_8, %c0_9] : memref<8x8x384xf32, #tpu.memory_space<vmem>>, vector<8x8x384xf32>
    tpu.vector_store %arg13[%c0_7, %c0_8, %c0_9], %10 {strides = array<i32>} : memref<8x8x384xf32, #tpu.memory_space<vmem>>, vector<8x8x384xf32>,
    %c0_10 = arith.constant 0 : index
    %c0_11 = arith.constant 0 : index
    %12 = vector.load %arg7[%c0_10, %c0_11] : memref<1x128xf32, #tpu.memory_space<vmem>>, vector<1x128xf32>
    %13 = vector.shape_cast %12 : vector<1x128xf32> to vector<1x128xf32>
    %14 = vector.broadcast %13 : vector<1x128xf32> to vector<8x128xf32>
    %c0_12 = arith.constant 0 : index
    %c0_13 = arith.constant 0 : index
    %15 = vector.load %arg5[%c0_12, %c0_13] : memref<128x384xf32, #tpu.memory_space<vmem>>, vector<128x384xf32>
    %c0_14 = arith.constant 0 : index
    %c0_15 = arith.constant 0 : index
    %16 = vector.load %arg12[%c0_14, %c0_15] : memref<8x128xf32, #tpu.memory_space<vmem>>, vector<8x128xf32>
    %c0_i32_16 = arith.constant 0 : i32
    %17 = arith.index_cast %c0_i32_16 : i32 to index
    %c0_17 = arith.constant 0 : index
    %c0_18 = arith.constant 0 : index
    %18 = vector.load %arg13[%17, %c0_17, %c0_18] : memref<8x8x384xf32, #tpu.memory_space<vmem>>, vector<1x8x384xf32>
    %19 = vector.shape_cast %18 : vector<1x8x384xf32> to vector<8x384xf32>
    %cst_19 = arith.constant dense<0.000000e+00> : vector<8x384xf32>
    %20 = tpu.matmul %16, %15, %cst_19 {dimension_numbers = #tpu.dot_dimension_numbers<[1], [0], [0], [1], [0, 0, 1, 1], [], []>} : vector<8x128xf32>, vector<128x384xf32>, vector<8x384xf32> -> vector<8x384xf32>
    %21 = vector.extract_strided_slice %19 {offsets = [0, 0], sizes = [8, 128], strides = [1, 1]} : vector<8x384xf32> to vector<8x128xf32>
    %22 = vector.extract_strided_slice %20 {offsets = [0, 0], sizes = [8, 128], strides = [1, 1]} : vector<8x384xf32> to vector<8x128xf32>
    %23 = arith.addf %21, %22 : vector<8x128xf32>
    %24 = arith.negf %23 : vector<8x128xf32>
    %25 = math.exp %24 : vector<8x128xf32>
    %cst_20 = arith.constant 1.000000e+00 : f32
    %26 = vector.broadcast %cst_20 : f32 to vector<8x128xf32>
    %27 = arith.addf %26, %25 : vector<8x128xf32>
    %28 = arith.divf %26, %27 : vector<8x128xf32>
    %29 = vector.extract_strided_slice %19 {offsets = [0, 128], sizes = [8, 128], strides = [1, 1]} : vector<8x384xf32> to vector<8x128xf32>
    %30 = vector.extract_strided_slice %20 {offsets = [0, 128], sizes = [8, 128], strides = [1, 1]} : vector<8x384xf32> to vector<8x128xf32>
    %31 = arith.addf %29, %30 : vector<8x128xf32>
    %32 = arith.negf %31 : vector<8x128xf32>
    %33 = math.exp %32 : vector<8x128xf32>
    %cst_21 = arith.constant 1.000000e+00 : f32
    %34 = vector.broadcast %cst_21 : f32 to vector<8x128xf32>
    %35 = arith.addf %34, %33 : vector<8x128xf32>
    %36 = arith.divf %34, %35 : vector<8x128xf32>
    %37 = vector.extract_strided_slice %19 {offsets = [0, 256], sizes = [8, 128], strides = [1, 1]} : vector<8x384xf32> to vector<8x128xf32>
    %38 = vector.extract_strided_slice %20 {offsets = [0, 256], sizes = [8, 128], strides = [1, 1]} : vector<8x384xf32> to vector<8x128xf32>
    %39 = arith.addf %38, %14 : vector<8x128xf32>
    %40 = arith.mulf %28, %39 : vector<8x128xf32>
    %41 = arith.addf %37, %40 : vector<8x128xf32>
    %42 = math.tanh %41 : vector<8x128xf32>
    %43 = arith.subf %16, %42 : vector<8x128xf32>
    %44 = arith.mulf %36, %43 : vector<8x128xf32>
    %45 = arith.addf %42, %44 : vector<8x128xf32>
    %46 = arith.index_cast %c0_i32_16 : i32 to index
    %c0_22 = arith.constant 0 : index
    %c0_23 = arith.constant 0 : index
    %47 = vector.load %arg14[%46, %c0_22, %c0_23] : memref<8x8x128xf32, #tpu.memory_space<vmem>>, vector<1x8x128xf32>
    %48 = vector.shape_cast %47 : vector<1x8x128xf32> to vector<8x128xf32>
    %49 = vector.shape_cast %45 : vector<8x128xf32> to vector<1x8x128xf32>
    tpu.vector_store %arg14[%46, %c0_22, %c0_23], %49 {strides = array<i32>} : memref<8x8x128xf32, #tpu.memory_space<vmem>>, vector<1x8x128xf32>,
    %c1_i32 = arith.constant 1 : i32
    %50 = arith.index_cast %c1_i32 : i32 to index
    %c0_24 = arith.constant 0 : index
    %c0_25 = arith.constant 0 : index
    %51 = vector.load %arg13[%50, %c0_24, %c0_25] : memref<8x8x384xf32, #tpu.memory_space<vmem>>, vector<1x8x384xf32>
    %52 = vector.shape_cast %51 : vector<1x8x384xf32> to vector<8x384xf32>
    %cst_26 = arith.constant dense<0.000000e+00> : vector<8x384xf32>
    %53 = tpu.matmul %45, %15, %cst_26 {dimension_numbers = #tpu.dot_dimension_numbers<[1], [0], [0], [1], [0, 0, 1, 1], [], []>} : vector<8x128xf32>, vector<128x384xf32>, vector<8x384xf32> -> vector<8x384xf32>
    %54 = vector.extract_strided_slice %52 {offsets = [0, 0], sizes = [8, 128], strides = [1, 1]} : vector<8x384xf32> to vector<8x128xf32>
    %55 = vector.extract_strided_slice %53 {offsets = [0, 0], sizes = [8, 128], strides = [1, 1]} : vector<8x384xf32> to vector<8x128xf32>
    %56 = arith.addf %54, %55 : vector<8x128xf32>
    %57 = arith.negf %56 : vector<8x128xf32>
    %58 = math.exp %57 : vector<8x128xf32>
    %cst_27 = arith.constant 1.000000e+00 : f32
    %59 = vector.broadcast %cst_27 : f32 to vector<8x128xf32>
    %60 = arith.addf %59, %58 : vector<8x128xf32>
    %61 = arith.divf %59, %60 : vector<8x128xf32>
    %62 = vector.extract_strided_slice %52 {offsets = [0, 128], sizes = [8, 128], strides = [1, 1]} : vector<8x384xf32> to vector<8x128xf32>
    %63 = vector.extract_strided_slice %53 {offsets = [0, 128], sizes = [8, 128], strides = [1, 1]} : vector<8x384xf32> to vector<8x128xf32>
    %64 = arith.addf %62, %63 : vector<8x128xf32>
    %65 = arith.negf %64 : vector<8x128xf32>
    %66 = math.exp %65 : vector<8x128xf32>
    %cst_28 = arith.constant 1.000000e+00 : f32
    %67 = vector.broadcast %cst_28 : f32 to vector<8x128xf32>
    %68 = arith.addf %67, %66 : vector<8x128xf32>
    %69 = arith.divf %67, %68 : vector<8x128xf32>
    %70 = vector.extract_strided_slice %52 {offsets = [0, 256], sizes = [8, 128], strides = [1, 1]} : vector<8x384xf32> to vector<8x128xf32>
    %71 = vector.extract_strided_slice %53 {offsets = [0, 256], sizes = [8, 128], strides = [1, 1]} : vector<8x384xf32> to vector<8x128xf32>
    %72 = arith.addf %71, %14 : vector<8x128xf32>
    %73 = arith.mulf %61, %72 : vector<8x128xf32>
    %74 = arith.addf %70, %73 : vector<8x128xf32>
    %75 = math.tanh %74 : vector<8x128xf32>
    %76 = arith.subf %45, %75 : vector<8x128xf32>
    %77 = arith.mulf %69, %76 : vector<8x128xf32>
    %78 = arith.addf %75, %77 : vector<8x128xf32>
    %79 = arith.index_cast %c1_i32 : i32 to index
    %c0_29 = arith.constant 0 : index
    %c0_30 = arith.constant 0 : index
    %80 = vector.load %arg14[%79, %c0_29, %c0_30] : memref<8x8x128xf32, #tpu.memory_space<vmem>>, vector<1x8x128xf32>
    %81 = vector.shape_cast %80 : vector<1x8x128xf32> to vector<8x128xf32>
    %82 = vector.shape_cast %78 : vector<8x128xf32> to vector<1x8x128xf32>
    tpu.vector_store %arg14[%79, %c0_29, %c0_30], %82 {strides = array<i32>} : memref<8x8x128xf32, #tpu.memory_space<vmem>>, vector<1x8x128xf32>,
    %c2_i32 = arith.constant 2 : i32
    %83 = arith.index_cast %c2_i32 : i32 to index
    %c0_31 = arith.constant 0 : index
    %c0_32 = arith.constant 0 : index
    %84 = vector.load %arg13[%83, %c0_31, %c0_32] : memref<8x8x384xf32, #tpu.memory_space<vmem>>, vector<1x8x384xf32>
    %85 = vector.shape_cast %84 : vector<1x8x384xf32> to vector<8x384xf32>
    %cst_33 = arith.constant dense<0.000000e+00> : vector<8x384xf32>
    %86 = tpu.matmul %78, %15, %cst_33 {dimension_numbers = #tpu.dot_dimension_numbers<[1], [0], [0], [1], [0, 0, 1, 1], [], []>} : vector<8x128xf32>, vector<128x384xf32>, vector<8x384xf32> -> vector<8x384xf32>
    %87 = vector.extract_strided_slice %85 {offsets = [0, 0], sizes = [8, 128], strides = [1, 1]} : vector<8x384xf32> to vector<8x128xf32>
    %88 = vector.extract_strided_slice %86 {offsets = [0, 0], sizes = [8, 128], strides = [1, 1]} : vector<8x384xf32> to vector<8x128xf32>
    %89 = arith.addf %87, %88 : vector<8x128xf32>
    %90 = arith.negf %89 : vector<8x128xf32>
    %91 = math.exp %90 : vector<8x128xf32>
    %cst_34 = arith.constant 1.000000e+00 : f32
    %92 = vector.broadcast %cst_34 : f32 to vector<8x128xf32>
    %93 = arith.addf %92, %91 : vector<8x128xf32>
    %94 = arith.divf %92, %93 : vector<8x128xf32>
    %95 = vector.extract_strided_slice %85 {offsets = [0, 128], sizes = [8, 128], strides = [1, 1]} : vector<8x384xf32> to vector<8x128xf32>
    %96 = vector.extract_strided_slice %86 {offsets = [0, 128], sizes = [8, 128], strides = [1, 1]} : vector<8x384xf32> to vector<8x128xf32>
    %97 = arith.addf %95, %96 : vector<8x128xf32>
    %98 = arith.negf %97 : vector<8x128xf32>
    %99 = math.exp %98 : vector<8x128xf32>
    %cst_35 = arith.constant 1.000000e+00 : f32
    %100 = vector.broadcast %cst_35 : f32 to vector<8x128xf32>
    %101 = arith.addf %100, %99 : vector<8x128xf32>
    %102 = arith.divf %100, %101 : vector<8x128xf32>
    %103 = vector.extract_strided_slice %85 {offsets = [0, 256], sizes = [8, 128], strides = [1, 1]} : vector<8x384xf32> to vector<8x128xf32>
    %104 = vector.extract_strided_slice %86 {offsets = [0, 256], sizes = [8, 128], strides = [1, 1]} : vector<8x384xf32> to vector<8x128xf32>
    %105 = arith.addf %104, %14 : vector<8x128xf32>
    %106 = arith.mulf %94, %105 : vector<8x128xf32>
    %107 = arith.addf %103, %106 : vector<8x128xf32>
    %108 = math.tanh %107 : vector<8x128xf32>
    %109 = arith.subf %78, %108 : vector<8x128xf32>
    %110 = arith.mulf %102, %109 : vector<8x128xf32>
    %111 = arith.addf %108, %110 : vector<8x128xf32>
    %112 = arith.index_cast %c2_i32 : i32 to index
    %c0_36 = arith.constant 0 : index
    %c0_37 = arith.constant 0 : index
    %113 = vector.load %arg14[%112, %c0_36, %c0_37] : memref<8x8x128xf32, #tpu.memory_space<vmem>>, vector<1x8x128xf32>
    %114 = vector.shape_cast %113 : vector<1x8x128xf32> to vector<8x128xf32>
    %115 = vector.shape_cast %111 : vector<8x128xf32> to vector<1x8x128xf32>
    tpu.vector_store %arg14[%112, %c0_36, %c0_37], %115 {strides = array<i32>} : memref<8x8x128xf32, #tpu.memory_space<vmem>>, vector<1x8x128xf32>,
    %c3_i32 = arith.constant 3 : i32
    %116 = arith.index_cast %c3_i32 : i32 to index
    %c0_38 = arith.constant 0 : index
    %c0_39 = arith.constant 0 : index
    %117 = vector.load %arg13[%116, %c0_38, %c0_39] : memref<8x8x384xf32, #tpu.memory_space<vmem>>, vector<1x8x384xf32>
    %118 = vector.shape_cast %117 : vector<1x8x384xf32> to vector<8x384xf32>
    %cst_40 = arith.constant dense<0.000000e+00> : vector<8x384xf32>
    %119 = tpu.matmul %111, %15, %cst_40 {dimension_numbers = #tpu.dot_dimension_numbers<[1], [0], [0], [1], [0, 0, 1, 1], [], []>} : vector<8x128xf32>, vector<128x384xf32>, vector<8x384xf32> -> vector<8x384xf32>
    %120 = vector.extract_strided_slice %118 {offsets = [0, 0], sizes = [8, 128], strides = [1, 1]} : vector<8x384xf32> to vector<8x128xf32>
    %121 = vector.extract_strided_slice %119 {offsets = [0, 0], sizes = [8, 128], strides = [1, 1]} : vector<8x384xf32> to vector<8x128xf32>
    %122 = arith.addf %120, %121 : vector<8x128xf32>
    %123 = arith.negf %122 : vector<8x128xf32>
    %124 = math.exp %123 : vector<8x128xf32>
    %cst_41 = arith.constant 1.000000e+00 : f32
    %125 = vector.broadcast %cst_41 : f32 to vector<8x128xf32>
    %126 = arith.addf %125, %124 : vector<8x128xf32>
    %127 = arith.divf %125, %126 : vector<8x128xf32>
    %128 = vector.extract_strided_slice %118 {offsets = [0, 128], sizes = [8, 128], strides = [1, 1]} : vector<8x384xf32> to vector<8x128xf32>
    %129 = vector.extract_strided_slice %119 {offsets = [0, 128], sizes = [8, 128], strides = [1, 1]} : vector<8x384xf32> to vector<8x128xf32>
    %130 = arith.addf %128, %129 : vector<8x128xf32>
    %131 = arith.negf %130 : vector<8x128xf32>
    %132 = math.exp %131 : vector<8x128xf32>
    %cst_42 = arith.constant 1.000000e+00 : f32
    %133 = vector.broadcast %cst_42 : f32 to vector<8x128xf32>
    %134 = arith.addf %133, %132 : vector<8x128xf32>
    %135 = arith.divf %133, %134 : vector<8x128xf32>
    %136 = vector.extract_strided_slice %118 {offsets = [0, 256], sizes = [8, 128], strides = [1, 1]} : vector<8x384xf32> to vector<8x128xf32>
    %137 = vector.extract_strided_slice %119 {offsets = [0, 256], sizes = [8, 128], strides = [1, 1]} : vector<8x384xf32> to vector<8x128xf32>
    %138 = arith.addf %137, %14 : vector<8x128xf32>
    %139 = arith.mulf %127, %138 : vector<8x128xf32>
    %140 = arith.addf %136, %139 : vector<8x128xf32>
    %141 = math.tanh %140 : vector<8x128xf32>
    %142 = arith.subf %111, %141 : vector<8x128xf32>
    %143 = arith.mulf %135, %142 : vector<8x128xf32>
    %144 = arith.addf %141, %143 : vector<8x128xf32>
    %145 = arith.index_cast %c3_i32 : i32 to index
    %c0_43 = arith.constant 0 : index
    %c0_44 = arith.constant 0 : index
    %146 = vector.load %arg14[%145, %c0_43, %c0_44] : memref<8x8x128xf32, #tpu.memory_space<vmem>>, vector<1x8x128xf32>
    %147 = vector.shape_cast %146 : vector<1x8x128xf32> to vector<8x128xf32>
    %148 = vector.shape_cast %144 : vector<8x128xf32> to vector<1x8x128xf32>
    tpu.vector_store %arg14[%145, %c0_43, %c0_44], %148 {strides = array<i32>} : memref<8x8x128xf32, #tpu.memory_space<vmem>>, vector<1x8x128xf32>,
    %c4_i32 = arith.constant 4 : i32
    %149 = arith.index_cast %c4_i32 : i32 to index
    %c0_45 = arith.constant 0 : index
    %c0_46 = arith.constant 0 : index
    %150 = vector.load %arg13[%149, %c0_45, %c0_46] : memref<8x8x384xf32, #tpu.memory_space<vmem>>, vector<1x8x384xf32>
    %151 = vector.shape_cast %150 : vector<1x8x384xf32> to vector<8x384xf32>
    %cst_47 = arith.constant dense<0.000000e+00> : vector<8x384xf32>
    %152 = tpu.matmul %144, %15, %cst_47 {dimension_numbers = #tpu.dot_dimension_numbers<[1], [0], [0], [1], [0, 0, 1, 1], [], []>} : vector<8x128xf32>, vector<128x384xf32>, vector<8x384xf32> -> vector<8x384xf32>
    %153 = vector.extract_strided_slice %151 {offsets = [0, 0], sizes = [8, 128], strides = [1, 1]} : vector<8x384xf32> to vector<8x128xf32>
    %154 = vector.extract_strided_slice %152 {offsets = [0, 0], sizes = [8, 128], strides = [1, 1]} : vector<8x384xf32> to vector<8x128xf32>
    %155 = arith.addf %153, %154 : vector<8x128xf32>
    %156 = arith.negf %155 : vector<8x128xf32>
    %157 = math.exp %156 : vector<8x128xf32>
    %cst_48 = arith.constant 1.000000e+00 : f32
    %158 = vector.broadcast %cst_48 : f32 to vector<8x128xf32>
    %159 = arith.addf %158, %157 : vector<8x128xf32>
    %160 = arith.divf %158, %159 : vector<8x128xf32>
    %161 = vector.extract_strided_slice %151 {offsets = [0, 128], sizes = [8, 128], strides = [1, 1]} : vector<8x384xf32> to vector<8x128xf32>
    %162 = vector.extract_strided_slice %152 {offsets = [0, 128], sizes = [8, 128], strides = [1, 1]} : vector<8x384xf32> to vector<8x128xf32>
    %163 = arith.addf %161, %162 : vector<8x128xf32>
    %164 = arith.negf %163 : vector<8x128xf32>
    %165 = math.exp %164 : vector<8x128xf32>
    %cst_49 = arith.constant 1.000000e+00 : f32
    %166 = vector.broadcast %cst_49 : f32 to vector<8x128xf32>
    %167 = arith.addf %166, %165 : vector<8x128xf32>
    %168 = arith.divf %166, %167 : vector<8x128xf32>
    %169 = vector.extract_strided_slice %151 {offsets = [0, 256], sizes = [8, 128], strides = [1, 1]} : vector<8x384xf32> to vector<8x128xf32>
    %170 = vector.extract_strided_slice %152 {offsets = [0, 256], sizes = [8, 128], strides = [1, 1]} : vector<8x384xf32> to vector<8x128xf32>
    %171 = arith.addf %170, %14 : vector<8x128xf32>
    %172 = arith.mulf %160, %171 : vector<8x128xf32>
    %173 = arith.addf %169, %172 : vector<8x128xf32>
    %174 = math.tanh %173 : vector<8x128xf32>
    %175 = arith.subf %144, %174 : vector<8x128xf32>
    %176 = arith.mulf %168, %175 : vector<8x128xf32>
    %177 = arith.addf %174, %176 : vector<8x128xf32>
    %178 = arith.index_cast %c4_i32 : i32 to index
    %c0_50 = arith.constant 0 : index
    %c0_51 = arith.constant 0 : index
    %179 = vector.load %arg14[%178, %c0_50, %c0_51] : memref<8x8x128xf32, #tpu.memory_space<vmem>>, vector<1x8x128xf32>
    %180 = vector.shape_cast %179 : vector<1x8x128xf32> to vector<8x128xf32>
    %181 = vector.shape_cast %177 : vector<8x128xf32> to vector<1x8x128xf32>
    tpu.vector_store %arg14[%178, %c0_50, %c0_51], %181 {strides = array<i32>} : memref<8x8x128xf32, #tpu.memory_space<vmem>>, vector<1x8x128xf32>,
    %c5_i32 = arith.constant 5 : i32
    %182 = arith.index_cast %c5_i32 : i32 to index
    %c0_52 = arith.constant 0 : index
    %c0_53 = arith.constant 0 : index
    %183 = vector.load %arg13[%182, %c0_52, %c0_53] : memref<8x8x384xf32, #tpu.memory_space<vmem>>, vector<1x8x384xf32>
    %184 = vector.shape_cast %183 : vector<1x8x384xf32> to vector<8x384xf32>
    %cst_54 = arith.constant dense<0.000000e+00> : vector<8x384xf32>
    %185 = tpu.matmul %177, %15, %cst_54 {dimension_numbers = #tpu.dot_dimension_numbers<[1], [0], [0], [1], [0, 0, 1, 1], [], []>} : vector<8x128xf32>, vector<128x384xf32>, vector<8x384xf32> -> vector<8x384xf32>
    %186 = vector.extract_strided_slice %184 {offsets = [0, 0], sizes = [8, 128], strides = [1, 1]} : vector<8x384xf32> to vector<8x128xf32>
    %187 = vector.extract_strided_slice %185 {offsets = [0, 0], sizes = [8, 128], strides = [1, 1]} : vector<8x384xf32> to vector<8x128xf32>
    %188 = arith.addf %186, %187 : vector<8x128xf32>
    %189 = arith.negf %188 : vector<8x128xf32>
    %190 = math.exp %189 : vector<8x128xf32>
    %cst_55 = arith.constant 1.000000e+00 : f32
    %191 = vector.broadcast %cst_55 : f32 to vector<8x128xf32>
    %192 = arith.addf %191, %190 : vector<8x128xf32>
    %193 = arith.divf %191, %192 : vector<8x128xf32>
    %194 = vector.extract_strided_slice %184 {offsets = [0, 128], sizes = [8, 128], strides = [1, 1]} : vector<8x384xf32> to vector<8x128xf32>
    %195 = vector.extract_strided_slice %185 {offsets = [0, 128], sizes = [8, 128], strides = [1, 1]} : vector<8x384xf32> to vector<8x128xf32>
    %196 = arith.addf %194, %195 : vector<8x128xf32>
    %197 = arith.negf %196 : vector<8x128xf32>
    %198 = math.exp %197 : vector<8x128xf32>
    %cst_56 = arith.constant 1.000000e+00 : f32
    %199 = vector.broadcast %cst_56 : f32 to vector<8x128xf32>
    %200 = arith.addf %199, %198 : vector<8x128xf32>
    %201 = arith.divf %199, %200 : vector<8x128xf32>
    %202 = vector.extract_strided_slice %184 {offsets = [0, 256], sizes = [8, 128], strides = [1, 1]} : vector<8x384xf32> to vector<8x128xf32>
    %203 = vector.extract_strided_slice %185 {offsets = [0, 256], sizes = [8, 128], strides = [1, 1]} : vector<8x384xf32> to vector<8x128xf32>
    %204 = arith.addf %203, %14 : vector<8x128xf32>
    %205 = arith.mulf %193, %204 : vector<8x128xf32>
    %206 = arith.addf %202, %205 : vector<8x128xf32>
    %207 = math.tanh %206 : vector<8x128xf32>
    %208 = arith.subf %177, %207 : vector<8x128xf32>
    %209 = arith.mulf %201, %208 : vector<8x128xf32>
    %210 = arith.addf %207, %209 : vector<8x128xf32>
    %211 = arith.index_cast %c5_i32 : i32 to index
    %c0_57 = arith.constant 0 : index
    %c0_58 = arith.constant 0 : index
    %212 = vector.load %arg14[%211, %c0_57, %c0_58] : memref<8x8x128xf32, #tpu.memory_space<vmem>>, vector<1x8x128xf32>
    %213 = vector.shape_cast %212 : vector<1x8x128xf32> to vector<8x128xf32>
    %214 = vector.shape_cast %210 : vector<8x128xf32> to vector<1x8x128xf32>
    tpu.vector_store %arg14[%211, %c0_57, %c0_58], %214 {strides = array<i32>} : memref<8x8x128xf32, #tpu.memory_space<vmem>>, vector<1x8x128xf32>,
    %c6_i32 = arith.constant 6 : i32
    %215 = arith.index_cast %c6_i32 : i32 to index
    %c0_59 = arith.constant 0 : index
    %c0_60 = arith.constant 0 : index
    %216 = vector.load %arg13[%215, %c0_59, %c0_60] : memref<8x8x384xf32, #tpu.memory_space<vmem>>, vector<1x8x384xf32>
    %217 = vector.shape_cast %216 : vector<1x8x384xf32> to vector<8x384xf32>
    %cst_61 = arith.constant dense<0.000000e+00> : vector<8x384xf32>
    %218 = tpu.matmul %210, %15, %cst_61 {dimension_numbers = #tpu.dot_dimension_numbers<[1], [0], [0], [1], [0, 0, 1, 1], [], []>} : vector<8x128xf32>, vector<128x384xf32>, vector<8x384xf32> -> vector<8x384xf32>
    %219 = vector.extract_strided_slice %217 {offsets = [0, 0], sizes = [8, 128], strides = [1, 1]} : vector<8x384xf32> to vector<8x128xf32>
    %220 = vector.extract_strided_slice %218 {offsets = [0, 0], sizes = [8, 128], strides = [1, 1]} : vector<8x384xf32> to vector<8x128xf32>
    %221 = arith.addf %219, %220 : vector<8x128xf32>
    %222 = arith.negf %221 : vector<8x128xf32>
    %223 = math.exp %222 : vector<8x128xf32>
    %cst_62 = arith.constant 1.000000e+00 : f32
    %224 = vector.broadcast %cst_62 : f32 to vector<8x128xf32>
    %225 = arith.addf %224, %223 : vector<8x128xf32>
    %226 = arith.divf %224, %225 : vector<8x128xf32>
    %227 = vector.extract_strided_slice %217 {offsets = [0, 128], sizes = [8, 128], strides = [1, 1]} : vector<8x384xf32> to vector<8x128xf32>
    %228 = vector.extract_strided_slice %218 {offsets = [0, 128], sizes = [8, 128], strides = [1, 1]} : vector<8x384xf32> to vector<8x128xf32>
    %229 = arith.addf %227, %228 : vector<8x128xf32>
    %230 = arith.negf %229 : vector<8x128xf32>
    %231 = math.exp %230 : vector<8x128xf32>
    %cst_63 = arith.constant 1.000000e+00 : f32
    %232 = vector.broadcast %cst_63 : f32 to vector<8x128xf32>
    %233 = arith.addf %232, %231 : vector<8x128xf32>
    %234 = arith.divf %232, %233 : vector<8x128xf32>
    %235 = vector.extract_strided_slice %217 {offsets = [0, 256], sizes = [8, 128], strides = [1, 1]} : vector<8x384xf32> to vector<8x128xf32>
    %236 = vector.extract_strided_slice %218 {offsets = [0, 256], sizes = [8, 128], strides = [1, 1]} : vector<8x384xf32> to vector<8x128xf32>
    %237 = arith.addf %236, %14 : vector<8x128xf32>
    %238 = arith.mulf %226, %237 : vector<8x128xf32>
    %239 = arith.addf %235, %238 : vector<8x128xf32>
    %240 = math.tanh %239 : vector<8x128xf32>
    %241 = arith.subf %210, %240 : vector<8x128xf32>
    %242 = arith.mulf %234, %241 : vector<8x128xf32>
    %243 = arith.addf %240, %242 : vector<8x128xf32>
    %244 = arith.index_cast %c6_i32 : i32 to index
    %c0_64 = arith.constant 0 : index
    %c0_65 = arith.constant 0 : index
    %245 = vector.load %arg14[%244, %c0_64, %c0_65] : memref<8x8x128xf32, #tpu.memory_space<vmem>>, vector<1x8x128xf32>
    %246 = vector.shape_cast %245 : vector<1x8x128xf32> to vector<8x128xf32>
    %247 = vector.shape_cast %243 : vector<8x128xf32> to vector<1x8x128xf32>
    tpu.vector_store %arg14[%244, %c0_64, %c0_65], %247 {strides = array<i32>} : memref<8x8x128xf32, #tpu.memory_space<vmem>>, vector<1x8x128xf32>,
    %c7_i32 = arith.constant 7 : i32
    %248 = arith.index_cast %c7_i32 : i32 to index
    %c0_66 = arith.constant 0 : index
    %c0_67 = arith.constant 0 : index
    %249 = vector.load %arg13[%248, %c0_66, %c0_67] : memref<8x8x384xf32, #tpu.memory_space<vmem>>, vector<1x8x384xf32>
    %250 = vector.shape_cast %249 : vector<1x8x384xf32> to vector<8x384xf32>
    %cst_68 = arith.constant dense<0.000000e+00> : vector<8x384xf32>
    %251 = tpu.matmul %243, %15, %cst_68 {dimension_numbers = #tpu.dot_dimension_numbers<[1], [0], [0], [1], [0, 0, 1, 1], [], []>} : vector<8x128xf32>, vector<128x384xf32>, vector<8x384xf32> -> vector<8x384xf32>
    %252 = vector.extract_strided_slice %250 {offsets = [0, 0], sizes = [8, 128], strides = [1, 1]} : vector<8x384xf32> to vector<8x128xf32>
    %253 = vector.extract_strided_slice %251 {offsets = [0, 0], sizes = [8, 128], strides = [1, 1]} : vector<8x384xf32> to vector<8x128xf32>
    %254 = arith.addf %252, %253 : vector<8x128xf32>
    %255 = arith.negf %254 : vector<8x128xf32>
    %256 = math.exp %255 : vector<8x128xf32>
    %cst_69 = arith.constant 1.000000e+00 : f32
    %257 = vector.broadcast %cst_69 : f32 to vector<8x128xf32>
    %258 = arith.addf %257, %256 : vector<8x128xf32>
    %259 = arith.divf %257, %258 : vector<8x128xf32>
    %260 = vector.extract_strided_slice %250 {offsets = [0, 128], sizes = [8, 128], strides = [1, 1]} : vector<8x384xf32> to vector<8x128xf32>
    %261 = vector.extract_strided_slice %251 {offsets = [0, 128], sizes = [8, 128], strides = [1, 1]} : vector<8x384xf32> to vector<8x128xf32>
    %262 = arith.addf %260, %261 : vector<8x128xf32>
    %263 = arith.negf %262 : vector<8x128xf32>
    %264 = math.exp %263 : vector<8x128xf32>
    %cst_70 = arith.constant 1.000000e+00 : f32
    %265 = vector.broadcast %cst_70 : f32 to vector<8x128xf32>
    %266 = arith.addf %265, %264 : vector<8x128xf32>
    %267 = arith.divf %265, %266 : vector<8x128xf32>
    %268 = vector.extract_strided_slice %250 {offsets = [0, 256], sizes = [8, 128], strides = [1, 1]} : vector<8x384xf32> to vector<8x128xf32>
    %269 = vector.extract_strided_slice %251 {offsets = [0, 256], sizes = [8, 128], strides = [1, 1]} : vector<8x384xf32> to vector<8x128xf32>
    %270 = arith.addf %269, %14 : vector<8x128xf32>
    %271 = arith.mulf %259, %270 : vector<8x128xf32>
    %272 = arith.addf %268, %271 : vector<8x128xf32>
    %273 = math.tanh %272 : vector<8x128xf32>
    %274 = arith.subf %243, %273 : vector<8x128xf32>
    %275 = arith.mulf %267, %274 : vector<8x128xf32>
    %276 = arith.addf %273, %275 : vector<8x128xf32>
    %277 = arith.index_cast %c7_i32 : i32 to index
    %c0_71 = arith.constant 0 : index
    %c0_72 = arith.constant 0 : index
    %278 = vector.load %arg14[%277, %c0_71, %c0_72] : memref<8x8x128xf32, #tpu.memory_space<vmem>>, vector<1x8x128xf32>
    %279 = vector.shape_cast %278 : vector<1x8x128xf32> to vector<8x128xf32>
    %280 = vector.shape_cast %276 : vector<8x128xf32> to vector<1x8x128xf32>
    tpu.vector_store %arg14[%277, %c0_71, %c0_72], %280 {strides = array<i32>} : memref<8x8x128xf32, #tpu.memory_space<vmem>>, vector<1x8x128xf32>,
    %c8_i32 = arith.constant 8 : i32
    %c0_73 = arith.constant 0 : index
    %c0_74 = arith.constant 0 : index
    %281 = vector.load %arg12[%c0_73, %c0_74] : memref<8x128xf32, #tpu.memory_space<vmem>>, vector<8x128xf32>
    tpu.vector_store %arg12[%c0_73, %c0_74], %276 {strides = array<i32>} : memref<8x128xf32, #tpu.memory_space<vmem>>, vector<8x128xf32>,
    %c0_75 = arith.constant 0 : index
    %c0_76 = arith.constant 0 : index
    %282 = vector.load %arg11[%c0_75, %c0_76] : memref<8x128xf32, #tpu.memory_space<vmem>>, vector<8x128xf32>
    tpu.vector_store %arg11[%c0_75, %c0_76], %276 {strides = array<i32>} : memref<8x128xf32, #tpu.memory_space<vmem>>, vector<8x128xf32>,
    %c0_77 = arith.constant 0 : index
    %c0_78 = arith.constant 0 : index
    %c0_79 = arith.constant 0 : index
    %283 = vector.load %arg14[%c0_77, %c0_78, %c0_79] : memref<8x8x128xf32, #tpu.memory_space<vmem>>, vector<8x8x128xf32>
    %284 = vector.shape_cast %283 : vector<8x8x128xf32> to vector<64x128xf32>
    %c0_80 = arith.constant 0 : index
    %c0_81 = arith.constant 0 : index
    %285 = vector.load %arg8[%c0_80, %c0_81] : memref<128x128xf32, #tpu.memory_space<vmem>>, vector<128x128xf32>
    %cst_82 = arith.constant dense<0.000000e+00> : vector<64x128xf32>
    %286 = tpu.matmul %284, %285, %cst_82 {dimension_numbers = #tpu.dot_dimension_numbers<[1], [0], [0], [1], [0, 0, 1, 1], [], []>} : vector<64x128xf32>, vector<128x128xf32>, vector<64x128xf32> -> vector<64x128xf32>
    %c0_83 = arith.constant 0 : index
    %c0_84 = arith.constant 0 : index
    %287 = vector.load %arg9[%c0_83, %c0_84] : memref<1x128xf32, #tpu.memory_space<vmem>>, vector<1x128xf32>
    %288 = vector.broadcast %287 : vector<1x128xf32> to vector<64x128xf32>
    %289 = arith.addf %286, %288 : vector<64x128xf32>
    %290 = vector.shape_cast %289 : vector<64x128xf32> to vector<8x8x128xf32>
    %c0_85 = arith.constant 0 : index
    %c0_86 = arith.constant 0 : index
    %c0_87 = arith.constant 0 : index
    %291 = vector.load %arg10[%c0_85, %c0_86, %c0_87] : memref<8x8x128xf32, #tpu.memory_space<vmem>>, vector<8x8x128xf32>
    tpu.vector_store %arg10[%c0_85, %c0_86, %c0_87], %290 {strides = array<i32>} : memref<8x8x128xf32, #tpu.memory_space<vmem>>, vector<8x8x128xf32>,
    return
  }
  func.func @transform_0(%arg0: i32, %arg1: i32) -> (i32, i32, i32) {
    %c0_i32 = arith.constant 0 : i32
    %c0_i32_0 = arith.constant 0 : i32
    return %arg1, %arg0, %c0_i32 : i32, i32, i32
  }
  func.func @transform_1(%arg0: i32, %arg1: i32) -> (i32, i32) {
    %c0_i32 = arith.constant 0 : i32
    %c0_i32_0 = arith.constant 0 : i32
    return %arg0, %c0_i32 : i32, i32
  }
  func.func @transform_2(%arg0: i32, %arg1: i32) -> (i32, i32) {
    %c0_i32 = arith.constant 0 : i32
    %c0_i32_0 = arith.constant 0 : i32
    %c0_i32_1 = arith.constant 0 : i32
    return %c0_i32, %c0_i32_0 : i32, i32
  }
  func.func @transform_3(%arg0: i32, %arg1: i32) -> (i32, i32) {
    %c0_i32 = arith.constant 0 : i32
    %c0_i32_0 = arith.constant 0 : i32
    %c0_i32_1 = arith.constant 0 : i32
    return %c0_i32, %c0_i32_0 : i32, i32
  }
  func.func @transform_4(%arg0: i32, %arg1: i32) -> (i32, i32) {
    %c0_i32 = arith.constant 0 : i32
    %c0_i32_0 = arith.constant 0 : i32
    %c0_i32_1 = arith.constant 0 : i32
    return %c0_i32, %c0_i32_0 : i32, i32
  }
  func.func @transform_5(%arg0: i32, %arg1: i32) -> (i32, i32) {
    %c0_i32 = arith.constant 0 : i32
    %c0_i32_0 = arith.constant 0 : i32
    %c0_i32_1 = arith.constant 0 : i32
    return %c0_i32, %c0_i32_0 : i32, i32
  }
  func.func @transform_6(%arg0: i32, %arg1: i32) -> (i32, i32) {
    %c0_i32 = arith.constant 0 : i32
    %c0_i32_0 = arith.constant 0 : i32
    %c0_i32_1 = arith.constant 0 : i32
    return %c0_i32, %c0_i32_0 : i32, i32
  }
  func.func @transform_7(%arg0: i32, %arg1: i32) -> (i32, i32) {
    %c0_i32 = arith.constant 0 : i32
    %c0_i32_0 = arith.constant 0 : i32
    %c0_i32_1 = arith.constant 0 : i32
    return %c0_i32, %c0_i32_0 : i32, i32
  }
  func.func @transform_8(%arg0: i32, %arg1: i32) -> (i32, i32, i32) {
    %c0_i32 = arith.constant 0 : i32
    %c0_i32_0 = arith.constant 0 : i32
    return %arg1, %arg0, %c0_i32 : i32, i32, i32
  }
  func.func @transform_9(%arg0: i32, %arg1: i32) -> (i32, i32) {
    %c0_i32 = arith.constant 0 : i32
    %c0_i32_0 = arith.constant 0 : i32
    return %arg0, %c0_i32 : i32, i32
  }
}

</mosaic_0001>

<bundles_post_ra>
// kernel: tpu_custom_call.1
= control target key start
LH: loop header
LB: loop body
LE: loop exit
PB: predicated region body
PF: predicated region fallthrough
CT: control target
= control target key end

     0   :  { %15 = vsyncpa [#allocation6], 0  ;;  %s3838_s0 = inlined_call_operand.hbm [shape: f32[8,8,128], index: 0, kind: input, shape index: {}]   ;;  %s3839_s1 = inlined_call_operand.hbm [shape: f32[8,128], index: 1, kind: input, shape index: {}]   ;;  %s3840_s2 = inlined_call_operand.hbm [shape: f32[128,384], index: 2, kind: input, shape index: {}]   ;;  %s3841_s3 = inlined_call_operand.hbm [shape: f32[128,384], index: 3, kind: input, shape index: {}]   ;;  %s3842_s4 = inlined_call_operand.vmem [shape: f32[1,384], index: 4, kind: input, shape index: {}]   ;;  %s3843_s5 = inlined_call_operand.vmem [shape: f32[1,128], index: 5, kind: input, shape index: {}]   ;;  %s3844_s6 = inlined_call_operand.hbm [shape: f32[128,128], index: 6, kind: input, shape index: {}]   ;;  %s3845_s7 = inlined_call_operand.vmem [shape: f32[1,128], index: 7, kind: input, shape index: {}]   ;;  %s3846_s8 = inlined_call_operand.hbm [shape: f32[8,8,128], index: 8, kind: output, shape index: {0}]   ;;  %s3847_s9 = inlined_call_operand.hbm [shape: f32[8,128], index: 9, kind: output, shape index: {1}]  }
   0x1   :  { %16 = vsyncpa [#allocation9], 0 }
   0x2   :  { %17 = vsyncpa [#allocation12], 0 }
   0x3   :  { %18 = vsyncpa [#allocation7], 0 }
   0x4   :  { %19 = vsyncpa [#allocation16], 0  ;;  %s2859_s30 = smov [#allocation8]  }
   0x5   :  { %s38_s10 = sshll.u32 %s2859_s30, 4  ;;  %s39_s10 = int_to_ptr.vmem [resolvable:$true] %s38_s10 }
   0x6   :  { %s2717_s11 = scalar_lea.vmem %s39_s10, 128  ;;  %p2722_p1 = scmp.lt.s32.totalorder %s39_s10, %s39_s10 }
   0x7   :  { %p2718_p0 = scmp.ne.s32.totalorder %s39_s10, %s2717_s11  ;;  %p2723_p2 = scmp.lt.s32.totalorder %s2717_s11, %s2717_s11 }
   0x9   :  { %p2724_p3 = por %p2723_p2, %p2722_p1 }
   0xb   :  { %p2725_p4 = pnand %p2724_p3, %p2718_p0 }
   0xd   :  { %2728 = shalt.err (!%p2725_p4)
}
   0xe   :  { %41 = dma.hbm_to_vmem [thread:$0]  %s3839_s1, 128, %s39_s10, [#allocation9]  }
   0xf   :  { %s2860_s14 = smov [#allocation11]   ;;  %s2861_s16 = smov [#allocation5]  }
  0x10   :  { %s59_s15 = sshll.u32 %s2860_s14, 4  ;;  %s25_s17 = sshll.u32 %s2861_s16, 4  ;;  %s60_s15 = int_to_ptr.vmem [resolvable:$true] %s59_s15  ;;  %s26_s17 = int_to_ptr.vmem [resolvable:$true] %s25_s17 }
  0x11   :  { %s2737_s18 = scalar_lea.vmem %s60_s15, 6144  ;;  %p2742_p6 = scmp.lt.s32.totalorder %s60_s15, %s60_s15 }
  0x12   :  { %p2738_p5 = scmp.ne.s32.totalorder %s60_s15, %s2737_s18  ;;  %p2743_p7 = scmp.lt.s32.totalorder %s2737_s18, %s2737_s18 }
  0x14   :  { %p2744_p8 = por %p2743_p7, %p2742_p6 }
  0x16   :  { %p2745_p9 = pnand %p2744_p8, %p2738_p5 }
  0x18   :  { %2748 = shalt.err (!%p2745_p9)
}
  0x19   :  { %s2862_s19 = smov 384   ;;  %s2863_s20 = smov 24  }
  0x1a   :  { %65 = dma.hbm_to_vmem [thread:$0]  %s3841_s3, 6144, %s60_s15, [#allocation12], %s2862_s19, %s2862_s19, %s2863_s20  }
  0x1b   :  { %s2757_s1 = scalar_lea.vmem %s26_s17, 1024  ;;  %p2762_p11 = scmp.lt.s32.totalorder %s26_s17, %s26_s17 }
  0x1c   :  { %p2758_p10 = scmp.ne.s32.totalorder %s26_s17, %s2757_s1  ;;  %p2763_p12 = scmp.lt.s32.totalorder %s2757_s1, %s2757_s1 }
  0x1e   :  { %p2764_p13 = por %p2763_p12, %p2762_p11 }
  0x20   :  { %p2765_p0 = pnand %p2764_p13, %p2758_p10 }
  0x22   :  { %2768 = shalt.err (!%p2765_p0)
}
  0x23   :  { %s2864_s23 = smov 128   ;;  %s2865_s24 = smov 8  }
  0x24   :  { %31 = dma.hbm_to_vmem [thread:$0]  %s3838_s0, 1024, %s26_s17, [#allocation6], %s2864_s23, %s2864_s23, %s2865_s24  }
  0x25   :  { %s2866_s27 = smov [#allocation10]   ;;  %s2867_s3 = smov [#allocation13]  }
  0x26   :  { %s47_s28 = sshll.u32 %s2866_s27, 4  ;;  %s75_s29 = sshll.u32 %s2867_s3, 4  ;;  %s48_s28 = int_to_ptr.vmem [resolvable:$true] %s47_s28  ;;  %s76_s29 = int_to_ptr.vmem [resolvable:$true] %s75_s29 }
  0x27   :  { %s2777_s30 = scalar_lea.vmem %s48_s28, 6144  ;;  %p2782_p2 = scmp.lt.s32.totalorder %s48_s28, %s48_s28 }
  0x28   :  { %p2778_p1 = scmp.ne.s32.totalorder %s48_s28, %s2777_s30  ;;  %p2783_p3 = scmp.lt.s32.totalorder %s2777_s30, %s2777_s30 }
  0x2a   :  { %p2784_p4 = por %p2783_p3, %p2782_p2 }
  0x2c   :  { %p2785_p5 = pnand %p2784_p4, %p2778_p1 }
  0x2e   :  { %2788 = shalt.err (!%p2785_p5)
}
  0x2f   :  { %53 = dma.hbm_to_vmem [thread:$0]  %s3840_s2, 6144, %s48_s28, [#allocation9], %s2862_s19, %s2862_s19, %s2863_s20  }
  0x30   :  { %s2797_s12 = scalar_lea.vmem %s76_s29, 2048  ;;  %p2802_p7 = scmp.lt.s32.totalorder %s76_s29, %s76_s29 }
  0x31   :  { %p2798_p6 = scmp.ne.s32.totalorder %s76_s29, %s2797_s12  ;;  %p2803_p8 = scmp.lt.s32.totalorder %s2797_s12, %s2797_s12 }
  0x33   :  { %p2804_p9 = por %p2803_p8, %p2802_p7 }
  0x35   :  { %p2805_p10 = pnand %p2804_p9, %p2798_p6 }
  0x37   :  { %2808 = shalt.err (!%p2805_p10)
}
  0x38   :  { %81 = dma.hbm_to_vmem [thread:$0]  %s3844_s6, 2048, %s76_s29, [#allocation12], %s2864_s23, %s2864_s23, %s2865_s24  }
  0x39   :  { %2849 = dma.done.wait [#allocation6], 1024  }
  0x3a   :  { %2850 = vsyncadd [#allocation6], 4294966272 }
  0x3b   :  { %2851 = dma.done.wait [#allocation9], 6272  }
  0x3c   :  { %2852 = vsyncadd [#allocation9], 4294961024 }
  0x3d   :  { %2853 = dma.done.wait [#allocation12], 8192  }
  0x3e   :  { %2854 = vsyncadd [#allocation12], 4294959104  ;;  %v3848_v0 = vmov 0.0   ;;  %v159_v1 = vld [vmem:[#allocation10 + $0x170] sm:$0xff]  ;;  %v158_v2 = vld [vmem:[#allocation10 + $0x168] sm:$0xff]  ;;  %vm2869_vm0 = vmmov 0  }
  0x3f   :  { %242 = vmatprep.mubr.f32.mxu1 %v3848_v0  ;;  %543 = vmatprep.mubr.f32.mxu0 %v3848_v0  ;;  %v156_v3 = vld [vmem:[#allocation10 + $0x158] sm:$0xff]  ;;  %v2945_v4 = vld [vmem:[#allocation11 + $0x170] sm:$0xff]  ;;  %v2947_v6 = vld [vmem:[#allocation11 + $0x168] sm:$0xff] }
  0x40   :  { %178 = vmatprep.subr.mxu1 %v159_v1  ;;  %3882 = vst [vmem:[#allocation22_spill] sm:$0xff] %v2945_v4  ;;  %v155_v5 = vld [vmem:[#allocation10 + $0x150] sm:$0xff]  ;;  %479 = vmatprep.subr.mxu0 %v2945_v4  ;;  %v153_v7 = vld [vmem:[#allocation10 + $0x140] sm:$0xff]  ;;  %v2950_v8 = vld [vmem:[#allocation11 + $0x158] sm:$0xff] }
  0x41   :  { %179 = vmatpush1.msra.mxu1 %v158_v2  ;;  %480 = vmatpush1.msra.mxu0 %v2947_v6  ;;  %v152_v9 = vld [vmem:[#allocation10 + $0x138] sm:$0xff]  ;;  %v2953_v10 = vld [vmem:[#allocation11 + $0x150] sm:$0xff]  ;;  %v2955_v11 = vld [vmem:[#allocation11 + $0x140] sm:$0xff] }
  0x42   :  { %180 = vmatprep.subr.mxu1 %v156_v3  ;;  %481 = vmatprep.subr.mxu0 %v2950_v8  ;;  %v150_v12 = vld [vmem:[#allocation10 + $0x128] sm:$0xff]  ;;  %v2958_v13 = vld [vmem:[#allocation11 + $0x138] sm:$0xff]  ;;  %v149_v14 = vld [vmem:[#allocation10 + $0x120] sm:$0xff] }
  0x43   :  { %181 = vmatpush1.msra.mxu1 %v155_v5  ;;  %482 = vmatpush1.msra.mxu0 %v2953_v10  ;;  %v2961_v15 = vld [vmem:[#allocation11 + $0x128] sm:$0xff]  ;;  %v147_v16 = vld [vmem:[#allocation10 + $0x110] sm:$0xff]  ;;  %v2964_v17 = vld [vmem:[#allocation11 + $0x120] sm:$0xff] }
  0x44   :  { %182 = vmatprep.subr.mxu1 %v153_v7  ;;  %483 = vmatprep.subr.mxu0 %v2955_v11  ;;  %v146_v18 = vld [vmem:[#allocation10 + $0x108] sm:$0xff]  ;;  %v2967_v19 = vld [vmem:[#allocation11 + $0x110] sm:$0xff]  ;;  %v144_v20 = vld [vmem:[#allocation10 + $0xf8] sm:$0xff] }
  0x45   :  { %183 = vmatpush1.msra.mxu1 %v152_v9  ;;  %484 = vmatpush1.msra.mxu0 %v2958_v13  ;;  %v2970_v21 = vld [vmem:[#allocation11 + $0x108] sm:$0xff]  ;;  %v143_v22 = vld [vmem:[#allocation10 + $0xf0] sm:$0xff]  ;;  %v2973_v23 = vld [vmem:[#allocation11 + $0xf8] sm:$0xff] }
  0x46   :  { %184 = vmatprep.subr.mxu1 %v150_v12  ;;  %485 = vmatprep.subr.mxu0 %v2961_v15  ;;  %v141_v24 = vld [vmem:[#allocation10 + $0xe0] sm:$0xff]  ;;  %v2976_v25 = vld [vmem:[#allocation11 + $0xf0] sm:$0xff]  ;;  %v140_v26 = vld [vmem:[#allocation10 + $0xd8] sm:$0xff] }
  0x47   :  { %185 = vmatpush1.msra.mxu1 %v149_v14  ;;  %486 = vmatpush1.msra.mxu0 %v2964_v17  ;;  %v2979_v27 = vld [vmem:[#allocation11 + $0xe0] sm:$0xff]  ;;  %v138_v28 = vld [vmem:[#allocation10 + $0xc8] sm:$0xff]  ;;  %v2982_v29 = vld [vmem:[#allocation11 + $0xd8] sm:$0xff] }
  0x48   :  { %186 = vmatprep.subr.mxu1 %v147_v16  ;;  %487 = vmatprep.subr.mxu0 %v2967_v19  ;;  %v137_v30 = vld [vmem:[#allocation10 + $0xc0] sm:$0xff]  ;;  %v2985_v31 = vld [vmem:[#allocation11 + $0xc8] sm:$0xff]  ;;  %v135_v32 = vld [vmem:[#allocation10 + $0xb0] sm:$0xff] }
  0x49   :  { %187 = vmatpush1.msra.mxu1 %v146_v18  ;;  %488 = vmatpush1.msra.mxu0 %v2970_v21  ;;  %v2988_v33 = vld [vmem:[#allocation11 + $0xc0] sm:$0xff]  ;;  %v134_v34 = vld [vmem:[#allocation10 + $0xa8] sm:$0xff]  ;;  %v2991_v35 = vld [vmem:[#allocation11 + $0xb0] sm:$0xff] }
  0x4a   :  { %188 = vmatprep.subr.mxu1 %v144_v20  ;;  %489 = vmatprep.subr.mxu0 %v2973_v23  ;;  %v132_v36 = vld [vmem:[#allocation10 + $0x98] sm:$0xff]  ;;  %v2994_v37 = vld [vmem:[#allocation11 + $0xa8] sm:$0xff]  ;;  %v131_v38 = vld [vmem:[#allocation10 + $0x90] sm:$0xff] }
  0x4b   :  { %189 = vmatpush1.msra.mxu1 %v143_v22  ;;  %490 = vmatpush1.msra.mxu0 %v2976_v25  ;;  %v2997_v39 = vld [vmem:[#allocation11 + $0x98] sm:$0xff]  ;;  %v129_v40 = vld [vmem:[#allocation10 + $0x80] sm:$0xff]  ;;  %v3000_v41 = vld [vmem:[#allocation11 + $0x90] sm:$0xff] }
  0x4c   :  { %190 = vmatprep.subr.mxu1 %v141_v24  ;;  %491 = vmatprep.subr.mxu0 %v2979_v27  ;;  %v128_v42 = vld [vmem:[#allocation10 + $0x78] sm:$0xff]  ;;  %v3003_v43 = vld [vmem:[#allocation11 + $0x80] sm:$0xff]  ;;  %v126_v44 = vld [vmem:[#allocation10 + $0x68] sm:$0xff] }
  0x4d   :  { %191 = vmatpush1.msra.mxu1 %v140_v26  ;;  %492 = vmatpush1.msra.mxu0 %v2982_v29  ;;  %v3006_v45 = vld [vmem:[#allocation11 + $0x78] sm:$0xff]  ;;  %v125_v46 = vld [vmem:[#allocation10 + $0x60] sm:$0xff]  ;;  %v3009_v47 = vld [vmem:[#allocation11 + $0x68] sm:$0xff] }
  0x4e   :  { %192 = vmatprep.subr.mxu1 %v138_v28  ;;  %493 = vmatprep.subr.mxu0 %v2985_v31  ;;  %v123_v48 = vld [vmem:[#allocation10 + $0x50] sm:$0xff]  ;;  %v3012_v49 = vld [vmem:[#allocation11 + $0x60] sm:$0xff]  ;;  %v122_v50 = vld [vmem:[#allocation10 + $0x48] sm:$0xff] }
  0x4f   :  { %193 = vmatpush1.msra.mxu1 %v137_v30  ;;  %494 = vmatpush1.msra.mxu0 %v2988_v33  ;;  %v3015_v51 = vld [vmem:[#allocation11 + $0x50] sm:$0xff]  ;;  %v120_v52 = vld [vmem:[#allocation10 + $0x38] sm:$0xff]  ;;  %v3018_v53 = vld [vmem:[#allocation11 + $0x48] sm:$0xff] }
  0x50   :  { %194 = vmatprep.subr.mxu1 %v135_v32  ;;  %495 = vmatprep.subr.mxu0 %v2991_v35  ;;  %v119_v54 = vld [vmem:[#allocation10 + $0x30] sm:$0xff]  ;;  %v3021_v55 = vld [vmem:[#allocation11 + $0x38] sm:$0xff]  ;;  %v117_v56 = vld [vmem:[#allocation10 + $0x20] sm:$0xff] }
  0x51   :  { %195 = vmatpush1.msra.mxu1 %v134_v34  ;;  %496 = vmatpush1.msra.mxu0 %v2994_v37  ;;  %v3024_v57 = vld [vmem:[#allocation11 + $0x30] sm:$0xff]  ;;  %v116_v58 = vld [vmem:[#allocation10 + $0x18] sm:$0xff]  ;;  %v3027_v59 = vld [vmem:[#allocation11 + $0x20] sm:$0xff] }
  0x52   :  { %196 = vmatprep.subr.mxu1 %v132_v36  ;;  %497 = vmatprep.subr.mxu0 %v2997_v39  ;;  %3883 = vst [vmem:[#allocation23_spill] sm:$0xff] %v3027_v59  ;;  %v114_v60 = vld [vmem:[#allocation10 + $0x8] sm:$0xff]  ;;  %v3030_v61 = vld [vmem:[#allocation11 + $0x18] sm:$0xff]  ;;  %v113_v62 = vld [vmem:[#allocation10] sm:$0xff] }
  0x53   :  { %197 = vmatpush1.msra.mxu1 %v131_v38  ;;  %498 = vmatpush1.msra.mxu0 %v3000_v41  ;;  %3884 = vst [vmem:[#allocation24_spill] sm:$0xff] %v3030_v61  ;;  %v3033_v63 = vld [vmem:[#allocation11 + $0x8] sm:$0xff]  ;;  %v3036_v1 = vld [vmem:[#allocation5] sm:$0xff]  ;;  %v3039_v3 = vld [vmem:[#allocation11] sm:$0xff] }
  0x54   :  { %198 = vmatprep.subr.mxu1 %v129_v40  ;;  %499 = vmatprep.subr.mxu0 %v3003_v43  ;;  %3885 = vst [vmem:[#allocation25_spill] sm:$0xff] %v3033_v63  ;;  %v160_v2 = vld [vmem:[#allocation10 + $0x178] sm:$0xff]  ;;  %3886 = vst [vmem:[#allocation26_spill] sm:$0xff] %v3039_v3  ;;  %v157_v5 = vld [vmem:[#allocation10 + $0x160] sm:$0xff] }
  0x55   :  { %199 = vmatpush1.msra.mxu1 %v128_v42  ;;  %500 = vmatpush1.msra.mxu0 %v3006_v45  ;;  %v3042_v7 = vld [vmem:[#allocation8] sm:$0xff]  ;;  %v3046_v9 = vld [vmem:[#allocation5 + $0x8] sm:$0xff]  ;;  %v154_v12 = vld [vmem:[#allocation10 + $0x148] sm:$0xff] }
  0x56   :  { %200 = vmatprep.subr.mxu1 %v126_v44  ;;  %501 = vmatprep.subr.mxu0 %v3009_v47  ;;  %v151_v14 = vld [vmem:[#allocation10 + $0x130] sm:$0xff]  ;;  %v3052_v16 = vld [vmem:[#allocation5 + $0x10] sm:$0xff]  ;;  %v148_v18 = vld [vmem:[#allocation10 + $0x118] sm:$0xff] }
  0x57   :  { %201 = vmatpush1.msra.mxu1 %v125_v46  ;;  %502 = vmatpush1.msra.mxu0 %v3012_v49  ;;  %v145_v20 = vld [vmem:[#allocation10 + $0x100] sm:$0xff]  ;;  %v3058_v22 = vld [vmem:[#allocation5 + $0x18] sm:$0xff]  ;;  %v142_v24 = vld [vmem:[#allocation10 + $0xe8] sm:$0xff] }
  0x58   :  { %202 = vmatprep.subr.mxu1 %v123_v48  ;;  %503 = vmatprep.subr.mxu0 %v3015_v51  ;;  %v139_v26 = vld [vmem:[#allocation10 + $0xd0] sm:$0xff]  ;;  %v109_v28 = vld [vmem:[#allocation5 + $0x20] sm:$0xff]  ;;  %v133_v32 = vld [vmem:[#allocation10 + $0xa0] sm:$0xff] }
  0x59   :  { %203 = vmatpush1.msra.mxu1 %v122_v50  ;;  %504 = vmatpush1.msra.mxu0 %v3018_v53  ;;  %v136_v30 = vld [vmem:[#allocation10 + $0xb8] sm:$0xff]  ;;  %v110_v34 = vld [vmem:[#allocation5 + $0x28] sm:$0xff]  ;;  %v130_v36 = vld [vmem:[#allocation10 + $0x88] sm:$0xff] }
  0x5a   :  { %204 = vmatprep.subr.mxu1 %v120_v52  ;;  %505 = vmatprep.subr.mxu0 %v3021_v55  ;;  %v127_v38 = vld [vmem:[#allocation10 + $0x70] sm:$0xff]  ;;  %v111_v40 = vld [vmem:[#allocation5 + $0x30] sm:$0xff]  ;;  %v124_v42 = vld [vmem:[#allocation10 + $0x58] sm:$0xff] }
  0x5b   :  { %205 = vmatpush1.msra.mxu1 %v119_v54  ;;  %506 = vmatpush1.msra.mxu0 %v3024_v57  ;;  %v121_v44 = vld [vmem:[#allocation10 + $0x40] sm:$0xff]  ;;  %v112_v46 = vld [vmem:[#allocation5 + $0x38] sm:$0xff]  ;;  %v118_v48 = vld [vmem:[#allocation10 + $0x28] sm:$0xff] }
  0x5c   :  { %206 = vmatprep.subr.mxu1 %v117_v56  ;;  %507 = vmatprep.subr.mxu0 %v3027_v59  ;;  %v115_v50 = vld [vmem:[#allocation10 + $0x10] sm:$0xff]  ;;  %v3076_v52 = vld [vmem:[#allocation11 + $0x178] sm:$0xff]  ;;  %v3082_v54 = vld [vmem:[#allocation11 + $0x160] sm:$0xff] }
  0x5d   :  { %207 = vmatpush1.msra.mxu1 %v116_v58  ;;  %508 = vmatpush1.msra.mxu0 %v3030_v61  ;;  %v3087_v56 = vld [vmem:[#allocation11 + $0x148] sm:$0xff]  ;;  %v3093_v58 = vld [vmem:[#allocation11 + $0x130] sm:$0xff] }
  0x5e   :  { %208 = vmatprep.subr.mxu1 %v114_v60  ;;  %509 = vmatprep.subr.mxu0 %v3033_v63  ;;  %v3098_v60 = vld [vmem:[#allocation11 + $0x118] sm:$0xff] }
  0x5f   :  { %209 = vmatpush1.msra.mxu1 %v113_v62  ;;  %510 = vmatpush1.msra.mxu0 %v3039_v3  ;;  %v3104_v62 = vld [vmem:[#allocation11 + $0x100] sm:$0xff] }
  0x60   :  { %243 = vmatmul.mubr.f32.vlgmr.msra.gmra.mxu1 %v3036_v1  ;;  %2199 = vmatprep.subr.mxu1 %v160_v2 }
  0x61   :  { %2200 = vmatpush3.msra.mxu1 %v160_v2  ;;  %544 = vmatmul.mubr.f32.vlgmr.msra.gmra.mxu0 %v3042_v7  ;;  %v3114_v2 = vld [vmem:[#allocation11 + $0xd0] sm:$0xff] }
  0x62   :  { %2201 = vmatprep.subr.mxu1 %v157_v5  ;;  %248 = vmatprep.mubr.f32.mxu1 %v3848_v0 }
  0x63   :  { %2202 = vmatpush3.msra.mxu1 %v157_v5  ;;  %646 = vmatprep.subr.mxu0 %v2945_v4  ;;  %v3120_v5 = vld [vmem:[#allocation11 + $0xb8] sm:$0xff] }
  0x64   :  { %249 = vmatmul.mubr.f32.gmra.mxu1 %v3046_v9  ;;  %2203 = vmatprep.subr.mxu1 %v154_v12 }
  0x65   :  { %2204 = vmatpush3.msra.mxu1 %v154_v12  ;;  %254 = vmatprep.mubr.f32.mxu1 %v3848_v0  ;;  %v3132_v12 = vld [vmem:[#allocation11 + $0x88] sm:$0xff] }
  0x66   :  { %2205 = vmatprep.subr.mxu1 %v151_v14  ;;  %647 = vmatpush1.msra.mxu0 %v2947_v6 }
  0x67   :  { %2206 = vmatpush3.msra.mxu1 %v151_v14  ;;  %648 = vmatprep.subr.mxu0 %v2950_v8  ;;  %v3138_v14 = vld [vmem:[#allocation11 + $0x70] sm:$0xff] }
  0x68   :  { %255 = vmatmul.mubr.f32.gmra.mxu1 %v3052_v16  ;;  %2207 = vmatprep.subr.mxu1 %v148_v18 }
  0x69   :  { %2208 = vmatpush3.msra.mxu1 %v148_v18  ;;  %260 = vmatprep.mubr.f32.mxu1 %v3848_v0  ;;  %v3150_v18 = vld [vmem:[#allocation11 + $0x40] sm:$0xff] }
  0x6a   :  { %2209 = vmatprep.subr.mxu1 %v145_v20  ;;  %649 = vmatpush1.msra.mxu0 %v2953_v10 }
  0x6b   :  { %2210 = vmatpush3.msra.mxu1 %v145_v20  ;;  %650 = vmatprep.subr.mxu0 %v2955_v11  ;;  %v3156_v20 = vld [vmem:[#allocation11 + $0x28] sm:$0xff] }
  0x6c   :  { %261 = vmatmul.mubr.f32.gmra.mxu1 %v3058_v22  ;;  %2211 = vmatprep.subr.mxu1 %v142_v24  ;;  %3887 = vst [vmem:[#allocation27_spill] sm:$0xff] %v3156_v20 }
  0x6d   :  { %2212 = vmatpush3.msra.mxu1 %v142_v24  ;;  %266 = vmatprep.mubr.f32.mxu1 %v3848_v0  ;;  %v163_v24 = vlaneseq }
  0x6e   :  { %2213 = vmatprep.subr.mxu1 %v139_v26  ;;  %651 = vmatpush1.msra.mxu0 %v2958_v13 }
  0x6f   :  { %2214 = vmatpush3.msra.mxu1 %v139_v26  ;;  %652 = vmatprep.subr.mxu0 %v2961_v15  ;;  %v164_v26 = vshrl.u32 %v163_v24, 7 }
  0x70   :  { %267 = vmatmul.mubr.f32.gmra.mxu1 %v109_v28  ;;  %2215 = vmatprep.subr.mxu1 %v136_v30 }
  0x71   :  { %2216 = vmatpush3.msra.mxu1 %v136_v30  ;;  %272 = vmatprep.mubr.f32.mxu1 %v3848_v0  ;;  %v161_v30 = vld [vmem:[%s3842_s4] sm:$0x7] }
  0x72   :  { %2217 = vmatprep.subr.mxu1 %v133_v32  ;;  %653 = vmatpush1.msra.mxu0 %v2964_v17 }
  0x73   :  { %2218 = vmatpush3.msra.mxu1 %v133_v32  ;;  %654 = vmatprep.subr.mxu0 %v2967_v19 }
  0x74   :  { %273 = vmatmul.mubr.f32.gmra.mxu1 %v110_v34  ;;  %2219 = vmatprep.subr.mxu1 %v130_v36 }
  0x75   :  { %2220 = vmatpush3.msra.mxu1 %v130_v36  ;;  %278 = vmatprep.mubr.f32.mxu1 %v3848_v0 }
  0x76   :  { %2221 = vmatprep.subr.mxu1 %v127_v38  ;;  %655 = vmatpush1.msra.mxu0 %v2970_v21 }
  0x77   :  { %2222 = vmatpush3.msra.mxu1 %v127_v38  ;;  %656 = vmatprep.subr.mxu0 %v2973_v23 }
  0x78   :  { %279 = vmatmul.mubr.f32.gmra.mxu1 %v111_v40  ;;  %2223 = vmatprep.subr.mxu1 %v124_v42 }
  0x79   :  { %2224 = vmatpush3.msra.mxu1 %v124_v42  ;;  %284 = vmatprep.mubr.f32.mxu1 %v3848_v0 }
  0x7a   :  { %2225 = vmatprep.subr.mxu1 %v121_v44  ;;  %657 = vmatpush1.msra.mxu0 %v2976_v25 }
  0x7b   :  { %2226 = vmatpush3.msra.mxu1 %v121_v44  ;;  %658 = vmatprep.subr.mxu0 %v2979_v27 }
  0x7c   :  { %285 = vmatmul.mubr.f32.gmra.mxu1 %v112_v46  ;;  %2227 = vmatprep.subr.mxu1 %v118_v48 }
  0x7d   :  { %2228 = vmatpush3.msra.mxu1 %v118_v48  ;;  %2231 = vmatprep.mubr.f32.mxu1 %v3036_v1  ;;  %v3108_v1 = vld [vmem:[#allocation11 + $0xe8] sm:$0xff] }
  0x7e   :  { %2229 = vmatprep.subr.mxu1 %v115_v50  ;;  %659 = vmatpush1.msra.mxu0 %v2982_v29 }
  0x7f   :  { %2230 = vmatpush3.msra.mxu1 %v115_v50  ;;  %660 = vmatprep.subr.mxu0 %v2985_v31 }
  0x80   :  { %2232 = vmatmul.mubr.f32.vlgmr.msra.gmra.mxu1 %v3046_v9  ;;  %2243 = vmatprep.subr.mxu1 %v3848_v0  ;;  %v3126_v9 = vld [vmem:[#allocation11 + $0xa0] sm:$0xff] }
  0x81   :  { %2244 = vmatpush3.msra.mxu1 %v3076_v52  ;;  %2234 = vmatprep.mubr.f32.mxu1 %v3052_v16  ;;  %v3144_v16 = vld [vmem:[#allocation11 + $0x58] sm:$0xff] }
  0x82   :  { %2245 = vmatprep.subr.mxu1 %v3848_v0  ;;  %661 = vmatpush1.msra.mxu0 %v2988_v33 }
  0x83   :  { %2246 = vmatpush3.msra.mxu1 %v3082_v54  ;;  %662 = vmatprep.subr.mxu0 %v2991_v35 }
  0x84   :  { %2247 = vmatprep.subr.mxu1 %v3848_v0  ;;  %2235 = vmatmul.mubr.f32.gmra.mxu1 %v3058_v22  ;;  %v3162_v22 = vld [vmem:[#allocation11 + $0x10] sm:$0xff] }
  0x85   :  { %2248 = vmatpush3.msra.mxu1 %v3087_v56  ;;  %2237 = vmatprep.mubr.f32.mxu1 %v109_v28  ;;  %3888 = vst [vmem:[#allocation28_spill] sm:$0xff] %v3162_v22  ;;  %v165_v28 = vsub.s32 0, %v164_v26 }
  0x86   :  { %2249 = vmatprep.subr.mxu1 %v3848_v0  ;;  %663 = vmatpush1.msra.mxu0 %v2994_v37 }
  0x87   :  { %2250 = vmatpush3.msra.mxu1 %v3093_v58  ;;  %664 = vmatprep.subr.mxu0 %v2997_v39  ;;  %v166_v38 = vrot.slane %v161_v30, %v165_v28 }
  0x88   :  { %2251 = vmatprep.subr.mxu1 %v3848_v0  ;;  %2238 = vmatmul.mubr.f32.gmra.mxu1 %v110_v34  ;;  %v169_v34 = vsub.s32 1, %v164_v26 }
  0x89   :  { %2252 = vmatpush3.msra.mxu1 %v3098_v60  ;;  %2240 = vmatprep.mubr.f32.mxu1 %v111_v40 }
  0x8a   :  { %2253 = vmatprep.subr.mxu1 %v3848_v0  ;;  %665 = vmatpush1.msra.mxu0 %v3000_v41  ;;  %v170_v42 = vrot.slane %v161_v30, %v169_v34 }
  0x8b   :  { %2254 = vmatpush3.msra.mxu1 %v3104_v62  ;;  %666 = vmatprep.subr.mxu0 %v3003_v43 }
  0x8c   :  { %2255 = vmatprep.subr.mxu1 %v3848_v0  ;;  %2241 = vmatmul.mubr.f32.gmra.mxu1 %v112_v46 }
  0x8d   :  { %2256 = vmatpush3.msra.mxu1 %v3108_v1  ;;  %2275 = vmatprep.mubr.msk.f32.mxu1 %vm2869_vm0, %v3848_v0 }
  0x8e   :  { %2257 = vmatprep.subr.mxu1 %v3848_v0  ;;  %667 = vmatpush1.msra.mxu0 %v3006_v45 }
  0x8f   :  { %2258 = vmatpush3.msra.mxu1 %v3114_v2  ;;  %668 = vmatprep.subr.mxu0 %v3009_v47 }
  0x90   :  { %2259 = vmatprep.subr.mxu1 %v3848_v0  ;;  %669 = vmatpush1.msra.mxu0 %v3012_v49 }
  0x91   :  { %2260 = vmatpush3.msra.mxu1 %v3120_v5  ;;  %670 = vmatprep.subr.mxu0 %v3015_v51 }
  0x92   :  { %2261 = vmatprep.subr.mxu1 %v3848_v0  ;;  %671 = vmatpush1.msra.mxu0 %v3018_v53 }
  0x93   :  { %2262 = vmatpush3.msra.mxu1 %v3126_v9  ;;  %672 = vmatprep.subr.mxu0 %v3021_v55 }
  0x94   :  { %2263 = vmatprep.subr.mxu1 %v3848_v0  ;;  %673 = vmatpush1.msra.mxu0 %v3024_v57 }
  0x95   :  { %2264 = vmatpush3.msra.mxu1 %v3132_v12  ;;  %674 = vmatprep.subr.mxu0 %v3027_v59 }
  0x96   :  { %2265 = vmatprep.subr.mxu1 %v3848_v0  ;;  %675 = vmatpush1.msra.mxu0 %v3030_v61 }
  0x97   :  { %2266 = vmatpush3.msra.mxu1 %v3138_v14  ;;  %676 = vmatprep.subr.mxu0 %v3033_v63 }
  0x98   :  { %2267 = vmatprep.subr.mxu1 %v3848_v0  ;;  %677 = vmatpush1.msra.mxu0 %v3039_v3 }
  0x99   :  { %2268 = vmatpush3.msra.mxu1 %v3144_v16  ;;  %710 = vmatprep.mubr.f32.mxu0 %v3848_v0 }
  0x9a   :  { %2269 = vmatprep.subr.mxu1 %v3848_v0  ;;  %814 = vmatprep.subr.mxu0 %v2945_v4 }
  0x9b   :  { %2270 = vmatpush3.msra.mxu1 %v3150_v18 }
  0x9c   :  { %2271 = vmatprep.subr.mxu1 %v3848_v0 }
  0x9d   :  { %2272 = vmatpush3.msra.mxu1 %v3156_v20 }
  0x9e   :  { %2273 = vmatprep.subr.mxu1 %v3848_v0 }
  0x9f   :  { %2274 = vmatpush3.msra.mxu1 %v3162_v22 }
  0xa0   :  { %2276 = vmatmul.mubr.f32.vlgmr.msra.gmra.mxu1 %v3042_v7  ;;  %2278 = vmatprep.subr.mxu1 %v3848_v0 }
  0xa1   :  { %2279 = vmatpush3.msra.mxu1 %v3076_v52  ;;  %2310 = vmatprep.mubr.msk.f32.mxu1 %vm2869_vm0, %v3848_v0 }
  0xa2   :  { %2280 = vmatprep.subr.mxu1 %v3848_v0 }
  0xa3   :  { %2281 = vmatpush3.msra.mxu1 %v3082_v54 }
  0xa4   :  { %2282 = vmatprep.subr.mxu1 %v3848_v0 }
  0xa5   :  { %2283 = vmatpush3.msra.mxu1 %v3087_v56 }
  0xa6   :  { %2284 = vmatprep.subr.mxu1 %v3848_v0 }
  0xa7   :  { %2285 = vmatpush3.msra.mxu1 %v3093_v58 }
  0xa8   :  { %2286 = vmatprep.subr.mxu1 %v3848_v0 }
  0xa9   :  { %2287 = vmatpush3.msra.mxu1 %v3098_v60 }
  0xaa   :  { %2288 = vmatprep.subr.mxu1 %v3848_v0 }
  0xab   :  { %2289 = vmatpush3.msra.mxu1 %v3104_v62 }
  0xac   :  { %2290 = vmatprep.subr.mxu1 %v3848_v0 }
  0xad   :  { %2291 = vmatpush3.msra.mxu1 %v3108_v1 }
  0xae   :  { %2292 = vmatprep.subr.mxu1 %v3848_v0 }
  0xaf   :  { %2293 = vmatpush3.msra.mxu1 %v3114_v2 }
  0xb0   :  { %2294 = vmatprep.subr.mxu1 %v3848_v0 }
  0xb1   :  { %2295 = vmatpush3.msra.mxu1 %v3120_v5 }
  0xb2   :  { %2296 = vmatprep.subr.mxu1 %v3848_v0 }
  0xb3   :  { %2297 = vmatpush3.msra.mxu1 %v3126_v9 }
  0xb4   :  { %2298 = vmatprep.subr.mxu1 %v3848_v0 }
  0xb5   :  { %2299 = vmatpush3.msra.mxu1 %v3132_v12 }
  0xb6   :  { %2300 = vmatprep.subr.mxu1 %v3848_v0 }
  0xb7   :  { %2301 = vmatpush3.msra.mxu1 %v3138_v14 }
  0xb8   :  { %2302 = vmatprep.subr.mxu1 %v3848_v0 }
  0xb9   :  { %2303 = vmatpush3.msra.mxu1 %v3144_v16 }
  0xba   :  { %2304 = vmatprep.subr.mxu1 %v3848_v0 }
  0xbb   :  { %2305 = vmatpush3.msra.mxu1 %v3150_v18 }
  0xbc   :  { %2306 = vmatprep.subr.mxu1 %v3848_v0 }
  0xbd   :  { %2307 = vmatpush3.msra.mxu1 %v3156_v20 }
  0xbe   :  { %2308 = vmatprep.subr.mxu1 %v3848_v0 }
  0xbf   :  { %2309 = vmatpush3.msra.mxu1 %v3162_v22 }
  0xc0   :  { %2313 = vmatprep.subr.mxu1 %v3848_v0 }
 0x120   :  { %v244_v32 = vpop.f32.mrf.mxu1 }
 0x122   :  { %v246_v36 = vpop.f32.mrf.mxu1 }
 0x124   :  { %v250_v40 = vpop.f32.mrf.mxu1 }
 0x125   :  { %v3206_v44 = vadd.f32 %v250_v40, %v166_v38 }
 0x126   :  { %v252_v46 = vpop.f32.mrf.mxu1 }
 0x127   :  { %3889 = vst [vmem:[#allocation29_spill] sm:$0xff] %v3206_v44  ;;  %v3208_v48 = vadd.f32 %v252_v46, %v170_v42 }
 0x128   :  { %v256_v50 = vpop.f32.mrf.mxu1 }
 0x129   :  { %3890 = vst [vmem:[#allocation30_spill] sm:$0xff] %v3208_v48  ;;  %v3210_v0 = vadd.f32 %v256_v50, %v166_v38  ;;  %v245_v48 = vadd.f32 %v244_v32, %v166_v38  ;;  %v545_v50 = vpop.f32.mrf.mxu0 }
 0x12a   :  { %v258_v24 = vpop.f32.mrf.mxu1 }
 0x12b   :  { %3891 = vst [vmem:[#allocation31_spill] sm:$0xff] %v3210_v0  ;;  %v3212_v4 = vadd.f32 %v258_v24, %v170_v42 }
 0x12c   :  { %v262_v22 = vpop.f32.mrf.mxu1 }
 0x12d   :  { %3892 = vst [vmem:[#allocation32_spill] sm:$0xff] %v3212_v4  ;;  %v3214_v3 = vadd.f32 %v262_v22, %v166_v38  ;;  %v620_v22 = vadd.f32 %v545_v50, %v245_v48 }
 0x12e   :  { %v264_v63 = vpop.f32.mrf.mxu1 }
 0x12f   :  { %3893 = vst [vmem:[#allocation33_spill] sm:$0xff] %v3214_v3  ;;  %v3216_v20 = vadd.f32 %v264_v63, %v170_v42  ;;  %v173_v63 = vsub.s32 2, %v164_v26 }
 0x130   :  { %v268_v28 = vpop.f32.mrf.mxu1 }
 0x131   :  { %3894 = vst [vmem:[#allocation34_spill] sm:$0xff] %v3216_v20  ;;  %v3218_v61 = vadd.f32 %v268_v28, %v166_v38 }
 0x132   :  { %v270_v34 = vpop.f32.mrf.mxu1 }
 0x133   :  { %3895 = vst [vmem:[#allocation35_spill] sm:$0xff] %v3218_v61  ;;  %v3220_v40 = vadd.f32 %v270_v34, %v170_v42  ;;  %v1998_v61 = vmul.f32 -1.442695, %v620_v22  ;;  %v547_v22 = vpop.f32.mrf.mxu0 }
 0x134   :  { %v274_v46 = vpop.f32.mrf.mxu1 }
 0x135   :  { %3896 = vst [vmem:[#allocation36_spill] sm:$0xff] %v3220_v40  ;;  %v3222_v44 = vadd.f32 %v274_v46, %v166_v38  ;;  %v174_v40 = vrot.slane %v161_v30, %v173_v63  ;;  %2580 = vpow2.f32 %v1998_v61 }
 0x136   :  { %v276_v0 = vpop.f32.mrf.mxu1 }
 0x137   :  { %3897 = vst [vmem:[#allocation37_spill] sm:$0xff] %v3222_v44  ;;  %v3224_v24 = vadd.f32 %v276_v0, %v170_v42 }
 0x138   :  { %v280_v4 = vpop.f32.mrf.mxu1 }
 0x139   :  { %3898 = vst [vmem:[#allocation38_spill] sm:$0xff] %v3224_v24  ;;  %v3226_v3 = vadd.f32 %v280_v4, %v166_v38 }
 0x13a   :  { %v282_v20 = vpop.f32.mrf.mxu1 }
 0x13b   :  { %3899 = vst [vmem:[#allocation39_spill] sm:$0xff] %v3226_v3  ;;  %v3228_v59 = vadd.f32 %v282_v20, %v170_v42  ;;  %v247_v20 = vadd.f32 %v246_v36, %v170_v42 }
 0x13c   :  { %v286_v28 = vpop.f32.mrf.mxu1 }
 0x13d   :  { %3900 = vst [vmem:[#allocation40_spill] sm:$0xff] %v3228_v59  ;;  %v3230_v34 = vadd.f32 %v286_v28, %v166_v38  ;;  %v627_v28 = vadd.f32 %v547_v22, %v247_v20 }
 0x13e   :  { %v288_v32 = vpop.f32.mrf.mxu1 }
 0x13f   :  { %3901 = vst [vmem:[#allocation41_spill] sm:$0xff] %v3230_v34  ;;  %v3232_v46 = vadd.f32 %v288_v32, %v170_v42 }
 0x140   :  { %v2233_v44 = vpop.f32.mrf.mxu1 }
 0x141   :  { %3902 = vst [vmem:[#allocation42_spill] sm:$0xff] %v3232_v46  ;;  %v3234_v0 = vadd.f32 %v2233_v44, %v174_v40 }
 0x142   :  { %v357_v24 = vpop.f32.mrf.mxu1  ;;  %v2581_v44 = vpop.eup %2580 }
 0x143   :  { %v624_v3 = vadd.f32 1.0, %v2581_v44 }
 0x144   :  { %v2236_v48 = vpop.f32.mrf.mxu1 }
 0x145   :  { %v3236_v4 = vadd.f32 %v2236_v48, %v174_v40  ;;  %v1999_v48 = vmul.f32 -1.442695, %v627_v28 }
 0x146   :  { %v367_v26 = vpop.f32.mrf.mxu1 }
 0x147   :  { %3903 = vst [vmem:[#allocation43_spill] sm:$0xff] %v3236_v4  ;;  %v3238_v50 = vadd.f32 %v367_v26, %v174_v40  ;;  %2582 = vpow2.f32 %v1999_v48 }
 0x148   :  { %v2239_v59 = vpop.f32.mrf.mxu1  ;;  %2584 = vrcp.f32 %v624_v3 }
 0x149   :  { %3904 = vst [vmem:[#allocation44_spill] sm:$0xff] %v3238_v50  ;;  %v3240_v38 = vadd.f32 %v2239_v59, %v174_v40  ;;  %v3251_v59 = vld [vmem:[%s3843_s5] ss:$0 sm:$0xff] }
 0x14a   :  { %v377_v30 = vpop.f32.mrf.mxu1 }
 0x14b   :  { %3905 = vst [vmem:[#allocation45_spill] sm:$0xff] %v3240_v38  ;;  %v3242_v63 = vadd.f32 %v377_v30, %v174_v40  ;;  %v358_v30 = vadd.f32 %v357_v24, %v174_v40  ;;  %v3912_v24 = vld [vmem:[#allocation24_spill] sm:$0xff] }
 0x14c   :  { %v2242_v32 = vpop.f32.mrf.mxu1 }
 0x14d   :  { %3906 = vst [vmem:[#allocation46_spill] sm:$0xff] %v3242_v63  ;;  %v3244_v61 = vadd.f32 %v2242_v32, %v174_v40 }
 0x14e   :  { %v387_v46 = vpop.f32.mrf.mxu1 }
 0x14f   :  { %3907 = vst [vmem:[#allocation47_spill] sm:$0xff] %v3244_v61  ;;  %v3246_v34 = vadd.f32 %v387_v46, %v174_v40  ;;  %v3910_v40 = vmov 0.0  }
 0x151   :  { %3908 = vst [vmem:[#allocation48_spill] sm:$0xff] %v3246_v34 }
 0x154   :  { %v2583_v42 = vpop.eup %2582 }
 0x155   :  { %v2585_v20 = vpop.eup %2584  ;;  %v631_v61 = vadd.f32 1.0, %v2583_v42  ;;  %v3915_v42 = vld [vmem:[#allocation26_spill] sm:$0xff] }
 0x160   :  { %v616_v36 = vpop.f32.mrf.mxu1 }
 0x161   :  { %v634_v26 = vadd.f32 %v3251_v59, %v616_v36  ;;  %v3914_v36 = vld [vmem:[#allocation25_spill] sm:$0xff] }
 0x162   :  { %v2277_v22 = vpop.f32.mrf.mxu1 }
 0x163   :  { %v635_v32 = vmul.f32 %v2585_v20, %v634_v26  ;;  %v3916_v26 = vld [vmem:[#allocation28_spill] sm:$0xff]  ;;  %v3917_v20 = vld [vmem:[#allocation22_spill] sm:$0xff] }
 0x165   :  { %v636_v46 = vadd.f32 %v635_v32, %v358_v30  ;;  %v3918_v32 = vld [vmem:[#allocation29_spill] sm:$0xff] }
 0x167   :  { %2586 = vtanh.f32 %v636_v46 }
 0x168   :  { %2588 = vrcp.f32 %v631_v61  ;;  %v3913_v61 = vld [vmem:[#allocation27_spill] sm:$0xff] }
 0x174   :  { %v2587_v28 = vpop.eup %2586 }
 0x175   :  { %v638_v3 = vsub.f32 %v3042_v7, %v2587_v28  ;;  %v2589_v44 = vpop.eup %2588  ;;  %v3911_v7 = vld [vmem:[#allocation23_spill] sm:$0xff] }
 0x177   :  { %v639_v48 = vmul.f32 %v2589_v44, %v638_v3 }
 0x179   :  { %v3255_v34 = vadd.f32 %v2587_v28, %v639_v48  ;;  %v3919_v48 = vld [vmem:[#allocation30_spill] sm:$0xff] }
 0x17b   :  { %3909 = vst [vmem:[#allocation49_spill] sm:$0xff] %v3255_v34  ;;  %711 = vmatmul.mubr.f32.vlgmr.msra.gmra.mxu0 %v3255_v34  ;;  %2311 = vmatmul.mubr.f32.vlgmr.msra.gmra.mxu1 %v3255_v34 }
 0x17c   :  { %815 = vmatpush1.msra.mxu0 %v2947_v6  ;;  %2314 = vmatpush3.msra.mxu1 %v3076_v52 }
 0x17d   :  { %816 = vmatprep.subr.mxu0 %v2950_v8  ;;  %2315 = vmatprep.subr.mxu1 %v3910_v40 }
 0x17e   :  { %817 = vmatpush1.msra.mxu0 %v2953_v10  ;;  %2316 = vmatpush3.msra.mxu1 %v3082_v54 }
 0x17f   :  { %818 = vmatprep.subr.mxu0 %v2955_v11  ;;  %2317 = vmatprep.subr.mxu1 %v3910_v40 }
 0x180   :  { %819 = vmatpush1.msra.mxu0 %v2958_v13  ;;  %2318 = vmatpush3.msra.mxu1 %v3087_v56 }
 0x181   :  { %820 = vmatprep.subr.mxu0 %v2961_v15  ;;  %2319 = vmatprep.subr.mxu1 %v3910_v40 }
 0x182   :  { %821 = vmatpush1.msra.mxu0 %v2964_v17  ;;  %2320 = vmatpush3.msra.mxu1 %v3093_v58 }
 0x183   :  { %822 = vmatprep.subr.mxu0 %v2967_v19  ;;  %2321 = vmatprep.subr.mxu1 %v3910_v40 }
 0x184   :  { %823 = vmatpush1.msra.mxu0 %v2970_v21  ;;  %2322 = vmatpush3.msra.mxu1 %v3098_v60 }
 0x185   :  { %824 = vmatprep.subr.mxu0 %v2973_v23  ;;  %2323 = vmatprep.subr.mxu1 %v3910_v40 }
 0x186   :  { %825 = vmatpush1.msra.mxu0 %v2976_v25  ;;  %2324 = vmatpush3.msra.mxu1 %v3104_v62 }
 0x187   :  { %826 = vmatprep.subr.mxu0 %v2979_v27  ;;  %2325 = vmatprep.subr.mxu1 %v3910_v40 }
 0x188   :  { %827 = vmatpush1.msra.mxu0 %v2982_v29  ;;  %2326 = vmatpush3.msra.mxu1 %v3108_v1 }
 0x189   :  { %828 = vmatprep.subr.mxu0 %v2985_v31  ;;  %2327 = vmatprep.subr.mxu1 %v3910_v40 }
 0x18a   :  { %829 = vmatpush1.msra.mxu0 %v2988_v33  ;;  %2328 = vmatpush3.msra.mxu1 %v3114_v2 }
 0x18b   :  { %830 = vmatprep.subr.mxu0 %v2991_v35  ;;  %2329 = vmatprep.subr.mxu1 %v3910_v40 }
 0x18c   :  { %831 = vmatpush1.msra.mxu0 %v2994_v37  ;;  %2330 = vmatpush3.msra.mxu1 %v3120_v5 }
 0x18d   :  { %832 = vmatprep.subr.mxu0 %v2997_v39  ;;  %2331 = vmatprep.subr.mxu1 %v3910_v40 }
 0x18e   :  { %833 = vmatpush1.msra.mxu0 %v3000_v41  ;;  %2332 = vmatpush3.msra.mxu1 %v3126_v9 }
 0x18f   :  { %834 = vmatprep.subr.mxu0 %v3003_v43  ;;  %2333 = vmatprep.subr.mxu1 %v3910_v40 }
 0x190   :  { %835 = vmatpush1.msra.mxu0 %v3006_v45  ;;  %2334 = vmatpush3.msra.mxu1 %v3132_v12 }
 0x191   :  { %836 = vmatprep.subr.mxu0 %v3009_v47  ;;  %2335 = vmatprep.subr.mxu1 %v3910_v40 }
 0x192   :  { %837 = vmatpush1.msra.mxu0 %v3012_v49  ;;  %2336 = vmatpush3.msra.mxu1 %v3138_v14 }
 0x193   :  { %838 = vmatprep.subr.mxu0 %v3015_v51  ;;  %2337 = vmatprep.subr.mxu1 %v3910_v40 }
 0x194   :  { %839 = vmatpush1.msra.mxu0 %v3018_v53  ;;  %2338 = vmatpush3.msra.mxu1 %v3144_v16 }
 0x195   :  { %840 = vmatprep.subr.mxu0 %v3021_v55  ;;  %2339 = vmatprep.subr.mxu1 %v3910_v40 }
 0x196   :  { %841 = vmatpush1.msra.mxu0 %v3024_v57  ;;  %2340 = vmatpush3.msra.mxu1 %v3150_v18 }
 0x197   :  { %842 = vmatprep.subr.mxu0 %v3911_v7  ;;  %2341 = vmatprep.subr.mxu1 %v3910_v40 }
 0x198   :  { %843 = vmatpush1.msra.mxu0 %v3912_v24  ;;  %2342 = vmatpush3.msra.mxu1 %v3913_v61 }
 0x199   :  { %844 = vmatprep.subr.mxu0 %v3914_v36  ;;  %2343 = vmatprep.subr.mxu1 %v3910_v40 }
 0x19a   :  { %845 = vmatpush1.msra.mxu0 %v3915_v42  ;;  %878 = vmatprep.mubr.f32.mxu0 %v3910_v40 }
 0x19b   :  { %2344 = vmatpush3.msra.mxu1 %v3916_v26  ;;  %2345 = vmatprep.mubr.msk.f32.mxu1 %vm2869_vm0, %v3910_v40 }
 0x19c   :  { %982 = vmatprep.subr.mxu0 %v3917_v20  ;;  %2348 = vmatprep.subr.mxu1 %v3910_v40 }
 0x23b   :  { %v712_v22 = vpop.f32.mrf.mxu0  ;;  %v783_v30 = vpop.f32.mrf.mxu1 }
 0x23c   :  { %v787_v46 = vadd.f32 %v712_v22, %v3918_v32  ;;  %v801_v20 = vadd.f32 %v3251_v59, %v783_v30  ;;  %v3441_v30 = vld [vmem:[#allocation11 + $0x110] sm:$0xff] }
 0x23d   :  { %v2312_v28 = vpop.f32.mrf.mxu1  ;;  %v714_v44 = vpop.f32.mrf.mxu0 }
 0x23e   :  { %v2000_v3 = vmul.f32 -1.442695, %v787_v46  ;;  %v794_v38 = vadd.f32 %v714_v44, %v3919_v48  ;;  %v3449_v44 = vld [vmem:[#allocation11 + $0xf8] sm:$0xff]  ;;  %v3453_v48 = vld [vmem:[#allocation11 + $0xf0] sm:$0xff] }
 0x240   :  { %2590 = vpow2.f32 %v2000_v3  ;;  %v2001_v63 = vmul.f32 -1.442695, %v794_v38  ;;  %v3445_v3 = vld [vmem:[#allocation11 + $0x108] sm:$0xff] }
 0x242   :  { %2592 = vpow2.f32 %v2001_v63  ;;  %v3413_v63 = vld [vmem:[#allocation11 + $0x168] sm:$0xff] }
 0x24d   :  { %v2591_v4 = vpop.eup %2590 }
 0x24e   :  { %v791_v50 = vadd.f32 1.0, %v2591_v4 }
 0x24f   :  { %v2593_v26 = vpop.eup %2592 }
 0x250   :  { %2594 = vrcp.f32 %v791_v50  ;;  %v798_v24 = vadd.f32 1.0, %v2593_v26  ;;  %v3437_v26 = vld [vmem:[#allocation11 + $0x120] sm:$0xff] }
 0x25d   :  { %v2595_v42 = vpop.eup %2594 }
 0x25e   :  { %v802_v36 = vmul.f32 %v2595_v42, %v801_v20  ;;  %v3433_v42 = vld [vmem:[#allocation11 + $0x128] sm:$0xff]  ;;  %v3457_v20 = vld [vmem:[#allocation11 + $0xe0] sm:$0xff] }
 0x260   :  { %v803_v61 = vadd.f32 %v802_v36, %v3234_v0  ;;  %v3429_v36 = vld [vmem:[#allocation11 + $0x138] sm:$0xff] }
 0x262   :  { %2596 = vtanh.f32 %v803_v61  ;;  %v3425_v61 = vld [vmem:[#allocation11 + $0x140] sm:$0xff] }
 0x263   :  { %2598 = vrcp.f32 %v798_v24  ;;  %v3421_v24 = vld [vmem:[#allocation11 + $0x150] sm:$0xff] }
 0x26f   :  { %v2597_v22 = vpop.eup %2596 }
 0x270   :  { %v805_v32 = vsub.f32 %v3255_v34, %v2597_v22  ;;  %v2599_v46 = vpop.eup %2598 }
 0x272   :  { %v806_v28 = vmul.f32 %v2599_v46, %v805_v32  ;;  %v3465_v32 = vld [vmem:[#allocation11 + $0xc8] sm:$0xff]  ;;  %v3469_v46 = vld [vmem:[#allocation11 + $0xc0] sm:$0xff] }
 0x274   :  { %v3331_v38 = vadd.f32 %v2597_v22, %v806_v28  ;;  %v3461_v22 = vld [vmem:[#allocation11 + $0xd8] sm:$0xff]  ;;  %v3473_v28 = vld [vmem:[#allocation11 + $0xb0] sm:$0xff] }
 0x276   :  { %3920 = vst [vmem:[#allocation23_spill] sm:$0xff] %v3331_v38  ;;  %879 = vmatmul.mubr.f32.vlgmr.msra.gmra.mxu0 %v3331_v38  ;;  %2346 = vmatmul.mubr.f32.vlgmr.msra.gmra.mxu1 %v3331_v38 }
 0x277   :  { %983 = vmatpush1.msra.mxu0 %v2947_v6  ;;  %2349 = vmatpush3.msra.mxu1 %v3076_v52  ;;  %v3921_v6 = vld [vmem:[#allocation24_spill] sm:$0xff] }
 0x278   :  { %984 = vmatprep.subr.mxu0 %v2950_v8  ;;  %2350 = vmatprep.subr.mxu1 %v3910_v40  ;;  %v3922_v8 = vld [vmem:[#allocation27_spill] sm:$0xff] }
 0x279   :  { %985 = vmatpush1.msra.mxu0 %v2953_v10  ;;  %2351 = vmatpush3.msra.mxu1 %v3082_v54  ;;  %v3923_v10 = vld [vmem:[#allocation25_spill] sm:$0xff] }
 0x27a   :  { %986 = vmatprep.subr.mxu0 %v2955_v11  ;;  %2352 = vmatprep.subr.mxu1 %v3910_v40  ;;  %v3924_v11 = vld [vmem:[#allocation26_spill] sm:$0xff] }
 0x27b   :  { %987 = vmatpush1.msra.mxu0 %v2958_v13  ;;  %2353 = vmatpush3.msra.mxu1 %v3087_v56  ;;  %v3925_v13 = vld [vmem:[#allocation28_spill] sm:$0xff] }
 0x27c   :  { %988 = vmatprep.subr.mxu0 %v2961_v15  ;;  %2354 = vmatprep.subr.mxu1 %v3910_v40  ;;  %v3400_v15 = vld [vmem:[#allocation11 + $0x170] sm:$0xff] }
 0x27d   :  { %989 = vmatpush1.msra.mxu0 %v2964_v17  ;;  %2355 = vmatpush3.msra.mxu1 %v3093_v58  ;;  %3926 = vst [vmem:[#allocation22_spill] sm:$0xff] %v3400_v15 }
 0x27e   :  { %990 = vmatprep.subr.mxu0 %v2967_v19  ;;  %2356 = vmatprep.subr.mxu1 %v3910_v40 }
 0x27f   :  { %991 = vmatpush1.msra.mxu0 %v2970_v21  ;;  %2357 = vmatpush3.msra.mxu1 %v3098_v60  ;;  %v3927_v21 = vld [vmem:[#allocation31_spill] sm:$0xff] }
 0x280   :  { %992 = vmatprep.subr.mxu0 %v2973_v23  ;;  %2358 = vmatprep.subr.mxu1 %v3910_v40 }
 0x281   :  { %993 = vmatpush1.msra.mxu0 %v2976_v25  ;;  %2359 = vmatpush3.msra.mxu1 %v3104_v62 }
 0x282   :  { %994 = vmatprep.subr.mxu0 %v2979_v27  ;;  %2360 = vmatprep.subr.mxu1 %v3910_v40 }
 0x283   :  { %995 = vmatpush1.msra.mxu0 %v2982_v29  ;;  %2361 = vmatpush3.msra.mxu1 %v3108_v1 }
 0x284   :  { %996 = vmatprep.subr.mxu0 %v2985_v31  ;;  %2362 = vmatprep.subr.mxu1 %v3910_v40  ;;  %v3928_v31 = vld [vmem:[#allocation32_spill] sm:$0xff] }
 0x285   :  { %997 = vmatpush1.msra.mxu0 %v2988_v33  ;;  %2363 = vmatpush3.msra.mxu1 %v3114_v2 }
 0x286   :  { %998 = vmatprep.subr.mxu0 %v2991_v35  ;;  %2364 = vmatprep.subr.mxu1 %v3910_v40 }
 0x287   :  { %999 = vmatpush1.msra.mxu0 %v2994_v37  ;;  %2365 = vmatpush3.msra.mxu1 %v3120_v5 }
 0x288   :  { %1000 = vmatprep.subr.mxu0 %v2997_v39  ;;  %2366 = vmatprep.subr.mxu1 %v3910_v40 }
 0x289   :  { %1001 = vmatpush1.msra.mxu0 %v3000_v41  ;;  %2367 = vmatpush3.msra.mxu1 %v3126_v9 }
 0x28a   :  { %1002 = vmatprep.subr.mxu0 %v3003_v43  ;;  %2368 = vmatprep.subr.mxu1 %v3910_v40 }
 0x28b   :  { %1003 = vmatpush1.msra.mxu0 %v3006_v45  ;;  %2369 = vmatpush3.msra.mxu1 %v3132_v12 }
 0x28c   :  { %1004 = vmatprep.subr.mxu0 %v3009_v47  ;;  %2370 = vmatprep.subr.mxu1 %v3910_v40 }
 0x28d   :  { %1005 = vmatpush1.msra.mxu0 %v3012_v49  ;;  %2371 = vmatpush3.msra.mxu1 %v3138_v14  ;;  %v3929_v49 = vld [vmem:[#allocation44_spill] sm:$0xff] }
 0x28e   :  { %1006 = vmatprep.subr.mxu0 %v3015_v51  ;;  %2372 = vmatprep.subr.mxu1 %v3910_v40 }
 0x28f   :  { %1007 = vmatpush1.msra.mxu0 %v3018_v53  ;;  %2373 = vmatpush3.msra.mxu1 %v3144_v16 }
 0x290   :  { %1008 = vmatprep.subr.mxu0 %v3021_v55  ;;  %2374 = vmatprep.subr.mxu1 %v3910_v40 }
 0x291   :  { %1009 = vmatpush1.msra.mxu0 %v3024_v57  ;;  %2375 = vmatpush3.msra.mxu1 %v3150_v18 }
 0x292   :  { %1010 = vmatprep.subr.mxu0 %v3911_v7  ;;  %2376 = vmatprep.subr.mxu1 %v3910_v40  ;;  %v3417_v7 = vld [vmem:[#allocation11 + $0x158] sm:$0xff] }
 0x293   :  { %1011 = vmatpush1.msra.mxu0 %v3921_v6  ;;  %2377 = vmatpush3.msra.mxu1 %v3922_v8  ;;  %v3477_v6 = vld [vmem:[#allocation11 + $0xa8] sm:$0xff] }
 0x294   :  { %1012 = vmatprep.subr.mxu0 %v3923_v10  ;;  %2378 = vmatprep.subr.mxu1 %v3910_v40  ;;  %v3481_v10 = vld [vmem:[#allocation11 + $0x98] sm:$0xff] }
 0x295   :  { %1013 = vmatpush1.msra.mxu0 %v3924_v11  ;;  %1046 = vmatprep.mubr.f32.mxu0 %v3910_v40  ;;  %v3485_v11 = vld [vmem:[#allocation11 + $0x90] sm:$0xff] }
 0x296   :  { %2379 = vmatpush3.msra.mxu1 %v3925_v13  ;;  %2380 = vmatprep.mubr.msk.f32.mxu1 %vm2869_vm0, %v3910_v40 }
 0x297   :  { %1150 = vmatprep.subr.mxu0 %v3400_v15  ;;  %2383 = vmatprep.subr.mxu1 %v3910_v40 }
 0x336   :  { %v880_v17 = vpop.f32.mrf.mxu0  ;;  %v951_v19 = vpop.f32.mrf.mxu1 }
 0x337   :  { %v955_v23 = vadd.f32 %v880_v17, %v3927_v21  ;;  %v969_v43 = vadd.f32 %v3251_v59, %v951_v19  ;;  %v3489_v17 = vld [vmem:[#allocation11 + $0x80] sm:$0xff]  ;;  %v3493_v19 = vld [vmem:[#allocation11 + $0x78] sm:$0xff]  ;;  %v3497_v21 = vld [vmem:[#allocation11 + $0x68] sm:$0xff] }
 0x338   :  { %v2347_v25 = vpop.f32.mrf.mxu1  ;;  %v882_v29 = vpop.f32.mrf.mxu0 }
 0x339   :  { %v2002_v27 = vmul.f32 -1.442695, %v955_v23  ;;  %v962_v33 = vadd.f32 %v882_v29, %v3928_v31  ;;  %v3501_v23 = vld [vmem:[#allocation11 + $0x60] sm:$0xff]  ;;  %v3505_v25 = vld [vmem:[#allocation11 + $0x50] sm:$0xff]  ;;  %v3513_v29 = vld [vmem:[#allocation11 + $0x38] sm:$0xff] }
 0x33a   :  { %v3517_v31 = vld [vmem:[#allocation11 + $0x30] sm:$0xff] }
 0x33b   :  { %2600 = vpow2.f32 %v2002_v27  ;;  %v2003_v35 = vmul.f32 -1.442695, %v962_v33  ;;  %v3509_v27 = vld [vmem:[#allocation11 + $0x48] sm:$0xff]  ;;  %v3521_v33 = vld [vmem:[#allocation11 + $0x20] sm:$0xff] }
 0x33d   :  { %2602 = vpow2.f32 %v2003_v35  ;;  %v3525_v35 = vld [vmem:[#allocation11 + $0x18] sm:$0xff] }
 0x33e   :  { %3931 = vst [vmem:[#allocation30_spill] sm:$0xff] %v3525_v35 }
 0x348   :  { %v2601_v37 = vpop.eup %2600 }
 0x349   :  { %v959_v39 = vadd.f32 1.0, %v2601_v37  ;;  %v3529_v37 = vld [vmem:[#allocation11 + $0x8] sm:$0xff] }
 0x34a   :  { %v2603_v41 = vpop.eup %2602  ;;  %3932 = vst [vmem:[#allocation24_spill] sm:$0xff] %v3529_v37 }
 0x34b   :  { %2604 = vrcp.f32 %v959_v39  ;;  %v966_v53 = vadd.f32 1.0, %v2603_v41  ;;  %v3533_v39 = vld [vmem:[#allocation11] sm:$0xff] }
 0x34c   :  { %3933 = vst [vmem:[#allocation25_spill] sm:$0xff] %v3533_v39 }
 0x358   :  { %v2605_v45 = vpop.eup %2604 }
 0x359   :  { %v970_v47 = vmul.f32 %v2605_v45, %v969_v43  ;;  %v3934_v45 = vld [vmem:[#allocation33_spill] sm:$0xff] }
 0x35b   :  { %v971_v51 = vadd.f32 %v970_v47, %v3929_v49 }
 0x35d   :  { %2606 = vtanh.f32 %v971_v51 }
 0x35e   :  { %2608 = vrcp.f32 %v966_v53 }
 0x36a   :  { %v2607_v55 = vpop.eup %2606 }
 0x36b   :  { %v973_v57 = vsub.f32 %v3331_v38, %v2607_v55  ;;  %v2609_v0 = vpop.eup %2608 }
 0x36d   :  { %v974_v4 = vmul.f32 %v2609_v0, %v973_v57 }
 0x36f   :  { %v3409_v50 = vadd.f32 %v2607_v55, %v974_v4  ;;  %v3935_v55 = vld [vmem:[#allocation34_spill] sm:$0xff] }
 0x371   :  { %3930 = vst [vmem:[#allocation29_spill] sm:$0xff] %v3409_v50  ;;  %1047 = vmatmul.mubr.f32.vlgmr.msra.gmra.mxu0 %v3409_v50  ;;  %2381 = vmatmul.mubr.f32.vlgmr.msra.gmra.mxu1 %v3409_v50 }
 0x372   :  { %1151 = vmatpush1.msra.mxu0 %v3413_v63  ;;  %2384 = vmatpush3.msra.mxu1 %v3076_v52 }
 0x373   :  { %1152 = vmatprep.subr.mxu0 %v3417_v7  ;;  %2385 = vmatprep.subr.mxu1 %v3910_v40 }
 0x374   :  { %1153 = vmatpush1.msra.mxu0 %v3421_v24  ;;  %2386 = vmatpush3.msra.mxu1 %v3082_v54 }
 0x375   :  { %1154 = vmatprep.subr.mxu0 %v3425_v61  ;;  %2387 = vmatprep.subr.mxu1 %v3910_v40 }
 0x376   :  { %1155 = vmatpush1.msra.mxu0 %v3429_v36  ;;  %2388 = vmatpush3.msra.mxu1 %v3087_v56 }
 0x377   :  { %1156 = vmatprep.subr.mxu0 %v3433_v42  ;;  %2389 = vmatprep.subr.mxu1 %v3910_v40 }
 0x378   :  { %1157 = vmatpush1.msra.mxu0 %v3437_v26  ;;  %2390 = vmatpush3.msra.mxu1 %v3093_v58 }
 0x379   :  { %1158 = vmatprep.subr.mxu0 %v3441_v30  ;;  %2391 = vmatprep.subr.mxu1 %v3910_v40 }
 0x37a   :  { %1159 = vmatpush1.msra.mxu0 %v3445_v3  ;;  %2392 = vmatpush3.msra.mxu1 %v3098_v60 }
 0x37b   :  { %1160 = vmatprep.subr.mxu0 %v3449_v44  ;;  %2393 = vmatprep.subr.mxu1 %v3910_v40 }
 0x37c   :  { %1161 = vmatpush1.msra.mxu0 %v3453_v48  ;;  %2394 = vmatpush3.msra.mxu1 %v3104_v62 }
 0x37d   :  { %1162 = vmatprep.subr.mxu0 %v3457_v20  ;;  %2395 = vmatprep.subr.mxu1 %v3910_v40 }
 0x37e   :  { %1163 = vmatpush1.msra.mxu0 %v3461_v22  ;;  %2396 = vmatpush3.msra.mxu1 %v3108_v1 }
 0x37f   :  { %1164 = vmatprep.subr.mxu0 %v3465_v32  ;;  %2397 = vmatprep.subr.mxu1 %v3910_v40 }
 0x380   :  { %1165 = vmatpush1.msra.mxu0 %v3469_v46  ;;  %2398 = vmatpush3.msra.mxu1 %v3114_v2 }
 0x381   :  { %1166 = vmatprep.subr.mxu0 %v3473_v28  ;;  %2399 = vmatprep.subr.mxu1 %v3910_v40 }
 0x382   :  { %1167 = vmatpush1.msra.mxu0 %v3477_v6  ;;  %2400 = vmatpush3.msra.mxu1 %v3120_v5 }
 0x383   :  { %1168 = vmatprep.subr.mxu0 %v3481_v10  ;;  %2401 = vmatprep.subr.mxu1 %v3910_v40 }
 0x384   :  { %1169 = vmatpush1.msra.mxu0 %v3485_v11  ;;  %2402 = vmatpush3.msra.mxu1 %v3126_v9 }
 0x385   :  { %1170 = vmatprep.subr.mxu0 %v3489_v17  ;;  %2403 = vmatprep.subr.mxu1 %v3910_v40 }
 0x386   :  { %1171 = vmatpush1.msra.mxu0 %v3493_v19  ;;  %2404 = vmatpush3.msra.mxu1 %v3132_v12 }
 0x387   :  { %1172 = vmatprep.subr.mxu0 %v3497_v21  ;;  %2405 = vmatprep.subr.mxu1 %v3910_v40 }
 0x388   :  { %1173 = vmatpush1.msra.mxu0 %v3501_v23  ;;  %2406 = vmatpush3.msra.mxu1 %v3138_v14 }
 0x389   :  { %1174 = vmatprep.subr.mxu0 %v3505_v25  ;;  %2407 = vmatprep.subr.mxu1 %v3910_v40 }
 0x38a   :  { %1175 = vmatpush1.msra.mxu0 %v3509_v27  ;;  %2408 = vmatpush3.msra.mxu1 %v3144_v16 }
 0x38b   :  { %1176 = vmatprep.subr.mxu0 %v3513_v29  ;;  %2409 = vmatprep.subr.mxu1 %v3910_v40 }
 0x38c   :  { %1177 = vmatpush1.msra.mxu0 %v3517_v31  ;;  %2410 = vmatpush3.msra.mxu1 %v3150_v18 }
 0x38d   :  { %1178 = vmatprep.subr.mxu0 %v3521_v33  ;;  %2411 = vmatprep.subr.mxu1 %v3910_v40 }
 0x38e   :  { %1179 = vmatpush1.msra.mxu0 %v3525_v35  ;;  %2412 = vmatpush3.msra.mxu1 %v3922_v8 }
 0x38f   :  { %1180 = vmatprep.subr.mxu0 %v3529_v37  ;;  %2413 = vmatprep.subr.mxu1 %v3910_v40  ;;  %v3936_v37 = vld [vmem:[#allocation43_spill] sm:$0xff] }
 0x390   :  { %1181 = vmatpush1.msra.mxu0 %v3533_v39  ;;  %1214 = vmatprep.mubr.f32.mxu0 %v3910_v40 }
 0x391   :  { %2414 = vmatpush3.msra.mxu1 %v3925_v13  ;;  %2415 = vmatprep.mubr.msk.f32.mxu1 %vm2869_vm0, %v3910_v40 }
 0x392   :  { %1318 = vmatprep.subr.mxu0 %v3400_v15  ;;  %2418 = vmatprep.subr.mxu1 %v3910_v40 }
 0x431   :  { %v1048_v41 = vpop.f32.mrf.mxu0  ;;  %v1119_v43 = vpop.f32.mrf.mxu1 }
 0x432   :  { %v1123_v47 = vadd.f32 %v1048_v41, %v3934_v45  ;;  %v1137_v15 = vadd.f32 %v3251_v59, %v1119_v43  ;;  %v3946_v43 = vld [vmem:[#allocation46_spill] sm:$0xff] }
 0x433   :  { %v2382_v49 = vpop.f32.mrf.mxu1  ;;  %v1050_v53 = vpop.f32.mrf.mxu0 }
 0x434   :  { %v2004_v51 = vmul.f32 -1.442695, %v1123_v47  ;;  %v1130_v57 = vadd.f32 %v1050_v53, %v3935_v55 }
 0x436   :  { %2610 = vpow2.f32 %v2004_v51  ;;  %v2005_v0 = vmul.f32 -1.442695, %v1130_v57 }
 0x438   :  { %2612 = vpow2.f32 %v2005_v0 }
 0x443   :  { %v2611_v4 = vpop.eup %2610 }
 0x444   :  { %v1127_v38 = vadd.f32 1.0, %v2611_v4 }
 0x445   :  { %v2613_v34 = vpop.eup %2612 }
 0x446   :  { %2614 = vrcp.f32 %v1127_v38  ;;  %v1134_v35 = vadd.f32 1.0, %v2613_v34 }
 0x453   :  { %v2615_v13 = vpop.eup %2614 }
 0x454   :  { %v1138_v39 = vmul.f32 %v2615_v13, %v1137_v15 }
 0x456   :  { %v1139_v8 = vadd.f32 %v1138_v39, %v3936_v37 }
 0x458   :  { %2616 = vtanh.f32 %v1139_v8 }
 0x459   :  { %2618 = vrcp.f32 %v1134_v35 }
 0x465   :  { %v2617_v41 = vpop.eup %2616 }
 0x466   :  { %v1141_v45 = vsub.f32 %v3409_v50, %v2617_v41  ;;  %v2619_v47 = vpop.eup %2618 }
 0x468   :  { %v1142_v49 = vmul.f32 %v2619_v47, %v1141_v45  ;;  %v3628_v47 = vld [vmem:[#allocation11 + $0x178] sm:$0xff] }
 0x46a   :  { %v3547_v51 = vadd.f32 %v2617_v41, %v1142_v49  ;;  %v3634_v49 = vld [vmem:[#allocation11 + $0x160] sm:$0xff] }
 0x46c   :  { %3937 = vst [vmem:[#allocation26_spill] sm:$0xff] %v3547_v51  ;;  %1215 = vmatmul.mubr.f32.vlgmr.msra.gmra.mxu0 %v3547_v51  ;;  %2416 = vmatmul.mubr.f32.vlgmr.msra.gmra.mxu1 %v3547_v51 }
 0x46d   :  { %1319 = vmatpush1.msra.mxu0 %v3413_v63  ;;  %2419 = vmatpush3.msra.mxu1 %v3076_v52  ;;  %v3938_v52 = vld [vmem:[#allocation30_spill] sm:$0xff] }
 0x46e   :  { %1320 = vmatprep.subr.mxu0 %v3417_v7  ;;  %2420 = vmatprep.subr.mxu1 %v3910_v40 }
 0x46f   :  { %1321 = vmatpush1.msra.mxu0 %v3421_v24  ;;  %2421 = vmatpush3.msra.mxu1 %v3082_v54  ;;  %v3939_v54 = vld [vmem:[#allocation27_spill] sm:$0xff] }
 0x470   :  { %1322 = vmatprep.subr.mxu0 %v3425_v61  ;;  %2422 = vmatprep.subr.mxu1 %v3910_v40 }
 0x471   :  { %1323 = vmatpush1.msra.mxu0 %v3429_v36  ;;  %2423 = vmatpush3.msra.mxu1 %v3087_v56  ;;  %v3940_v56 = vld [vmem:[#allocation24_spill] sm:$0xff] }
 0x472   :  { %1324 = vmatprep.subr.mxu0 %v3433_v42  ;;  %2424 = vmatprep.subr.mxu1 %v3910_v40 }
 0x473   :  { %1325 = vmatpush1.msra.mxu0 %v3437_v26  ;;  %2425 = vmatpush3.msra.mxu1 %v3093_v58  ;;  %v3941_v58 = vld [vmem:[#allocation25_spill] sm:$0xff] }
 0x474   :  { %1326 = vmatprep.subr.mxu0 %v3441_v30  ;;  %2426 = vmatprep.subr.mxu1 %v3910_v40 }
 0x475   :  { %1327 = vmatpush1.msra.mxu0 %v3445_v3  ;;  %2427 = vmatpush3.msra.mxu1 %v3098_v60  ;;  %v3942_v60 = vld [vmem:[#allocation28_spill] sm:$0xff] }
 0x476   :  { %1328 = vmatprep.subr.mxu0 %v3449_v44  ;;  %2428 = vmatprep.subr.mxu1 %v3910_v40 }
 0x477   :  { %1329 = vmatpush1.msra.mxu0 %v3453_v48  ;;  %2429 = vmatpush3.msra.mxu1 %v3104_v62  ;;  %v3943_v62 = vld [vmem:[#allocation22_spill] sm:$0xff] }
 0x478   :  { %1330 = vmatprep.subr.mxu0 %v3457_v20  ;;  %2430 = vmatprep.subr.mxu1 %v3910_v40 }
 0x479   :  { %1331 = vmatpush1.msra.mxu0 %v3461_v22  ;;  %2431 = vmatpush3.msra.mxu1 %v3108_v1 }
 0x47a   :  { %1332 = vmatprep.subr.mxu0 %v3465_v32  ;;  %2432 = vmatprep.subr.mxu1 %v3910_v40 }
 0x47b   :  { %1333 = vmatpush1.msra.mxu0 %v3469_v46  ;;  %2433 = vmatpush3.msra.mxu1 %v3114_v2 }
 0x47c   :  { %1334 = vmatprep.subr.mxu0 %v3473_v28  ;;  %2434 = vmatprep.subr.mxu1 %v3910_v40 }
 0x47d   :  { %1335 = vmatpush1.msra.mxu0 %v3477_v6  ;;  %2435 = vmatpush3.msra.mxu1 %v3120_v5  ;;  %v3944_v5 = vld [vmem:[#allocation35_spill] sm:$0xff] }
 0x47e   :  { %1336 = vmatprep.subr.mxu0 %v3481_v10  ;;  %2436 = vmatprep.subr.mxu1 %v3910_v40 }
 0x47f   :  { %1337 = vmatpush1.msra.mxu0 %v3485_v11  ;;  %2437 = vmatpush3.msra.mxu1 %v3126_v9 }
 0x480   :  { %1338 = vmatprep.subr.mxu0 %v3489_v17  ;;  %2438 = vmatprep.subr.mxu1 %v3910_v40 }
 0x481   :  { %1339 = vmatpush1.msra.mxu0 %v3493_v19  ;;  %2439 = vmatpush3.msra.mxu1 %v3132_v12 }
 0x482   :  { %1340 = vmatprep.subr.mxu0 %v3497_v21  ;;  %2440 = vmatprep.subr.mxu1 %v3910_v40 }
 0x483   :  { %1341 = vmatpush1.msra.mxu0 %v3501_v23  ;;  %2441 = vmatpush3.msra.mxu1 %v3138_v14 }
 0x484   :  { %1342 = vmatprep.subr.mxu0 %v3505_v25  ;;  %2442 = vmatprep.subr.mxu1 %v3910_v40 }
 0x485   :  { %1343 = vmatpush1.msra.mxu0 %v3509_v27  ;;  %2443 = vmatpush3.msra.mxu1 %v3144_v16 }
 0x486   :  { %1344 = vmatprep.subr.mxu0 %v3513_v29  ;;  %2444 = vmatprep.subr.mxu1 %v3910_v40 }
 0x487   :  { %1345 = vmatpush1.msra.mxu0 %v3517_v31  ;;  %2445 = vmatpush3.msra.mxu1 %v3150_v18  ;;  %v3945_v18 = vld [vmem:[#allocation36_spill] sm:$0xff] }
 0x488   :  { %1346 = vmatprep.subr.mxu0 %v3521_v33  ;;  %2446 = vmatprep.subr.mxu1 %v3910_v40 }
 0x489   :  { %1347 = vmatpush1.msra.mxu0 %v3938_v52  ;;  %2447 = vmatpush3.msra.mxu1 %v3939_v54  ;;  %v3640_v54 = vld [vmem:[#allocation11 + $0x148] sm:$0xff] }
 0x48a   :  { %1348 = vmatprep.subr.mxu0 %v3940_v56  ;;  %2448 = vmatprep.subr.mxu1 %v3910_v40 }
 0x48b   :  { %1349 = vmatpush1.msra.mxu0 %v3941_v58  ;;  %1382 = vmatprep.mubr.f32.mxu0 %v3910_v40 }
 0x48c   :  { %2449 = vmatpush3.msra.mxu1 %v3942_v60  ;;  %2450 = vmatprep.mubr.msk.f32.mxu1 %vm2869_vm0, %v3910_v40  ;;  %v3646_v60 = vld [vmem:[#allocation11 + $0x130] sm:$0xff] }
 0x48d   :  { %1486 = vmatprep.subr.mxu0 %v3943_v62  ;;  %2453 = vmatprep.subr.mxu1 %v3910_v40 }
 0x52c   :  { %v1216_v1 = vpop.f32.mrf.mxu0  ;;  %v1287_v2 = vpop.f32.mrf.mxu1 }
 0x52d   :  { %v1291_v9 = vadd.f32 %v1216_v1, %v3944_v5  ;;  %v1305_v35 = vadd.f32 %v3251_v59, %v1287_v2  ;;  %v3652_v1 = vld [vmem:[#allocation11 + $0x118] sm:$0xff]  ;;  %v3658_v2 = vld [vmem:[#allocation11 + $0x100] sm:$0xff]  ;;  %v3664_v5 = vld [vmem:[#allocation11 + $0xe8] sm:$0xff] }
 0x52e   :  { %v2417_v12 = vpop.f32.mrf.mxu1  ;;  %v1218_v16 = vpop.f32.mrf.mxu0 }
 0x52f   :  { %v2006_v14 = vmul.f32 -1.442695, %v1291_v9  ;;  %v1298_v34 = vadd.f32 %v1218_v16, %v3945_v18  ;;  %v3670_v9 = vld [vmem:[#allocation11 + $0xd0] sm:$0xff]  ;;  %v3676_v12 = vld [vmem:[#allocation11 + $0xb8] sm:$0xff]  ;;  %v3688_v16 = vld [vmem:[#allocation11 + $0x88] sm:$0xff] }
 0x530   :  { %v3694_v18 = vld [vmem:[#allocation11 + $0x70] sm:$0xff] }
 0x531   :  { %2620 = vpow2.f32 %v2006_v14  ;;  %v2007_v38 = vmul.f32 -1.442695, %v1298_v34  ;;  %v3682_v14 = vld [vmem:[#allocation11 + $0xa0] sm:$0xff]  ;;  %v3700_v34 = vld [vmem:[#allocation11 + $0x58] sm:$0xff] }
 0x533   :  { %2622 = vpow2.f32 %v2007_v38  ;;  %v3706_v38 = vld [vmem:[#allocation11 + $0x40] sm:$0xff] }
 0x53e   :  { %v2621_v8 = vpop.eup %2620 }
 0x53f   :  { %v1295_v13 = vadd.f32 1.0, %v2621_v8  ;;  %v3712_v8 = vld [vmem:[#allocation11 + $0x28] sm:$0xff] }
 0x540   :  { %v2623_v15 = vpop.eup %2622  ;;  %3947 = vst [vmem:[#allocation31_spill] sm:$0xff] %v3712_v8 }
 0x541   :  { %2624 = vrcp.f32 %v1295_v13  ;;  %v1302_v55 = vadd.f32 1.0, %v2623_v15  ;;  %v3719_v13 = vld [vmem:[#allocation11 + $0x10] sm:$0xff] }
 0x542   :  { %3948 = vst [vmem:[#allocation32_spill] sm:$0xff] %v3719_v13 }
 0x54e   :  { %v2625_v37 = vpop.eup %2624 }
 0x54f   :  { %v1306_v39 = vmul.f32 %v2625_v37, %v1305_v35  ;;  %v3949_v37 = vld [vmem:[#allocation37_spill] sm:$0xff] }
 0x551   :  { %v1307_v53 = vadd.f32 %v1306_v39, %v3946_v43 }
 0x553   :  { %2626 = vtanh.f32 %v1307_v53 }
 0x554   :  { %2628 = vrcp.f32 %v1302_v55 }
 0x560   :  { %v2627_v57 = vpop.eup %2626 }
 0x561   :  { %v1309_v0 = vsub.f32 %v3547_v51, %v2627_v57  ;;  %v2629_v4 = vpop.eup %2628 }
 0x563   :  { %v1310_v41 = vmul.f32 %v2629_v4, %v1309_v0 }
 0x565   :  { %v3623_v45 = vadd.f32 %v2627_v57, %v1310_v41  ;;  %v3950_v57 = vld [vmem:[#allocation38_spill] sm:$0xff] }
 0x567   :  { %1383 = vmatmul.mubr.f32.vlgmr.msra.gmra.mxu0 %v3623_v45  ;;  %2451 = vmatmul.mubr.f32.vlgmr.msra.gmra.mxu1 %v3623_v45 }
 0x568   :  { %1487 = vmatpush1.msra.mxu0 %v3413_v63  ;;  %2454 = vmatpush3.msra.mxu1 %v3628_v47 }
 0x569   :  { %1488 = vmatprep.subr.mxu0 %v3417_v7  ;;  %2455 = vmatprep.subr.mxu1 %v3910_v40 }
 0x56a   :  { %1489 = vmatpush1.msra.mxu0 %v3421_v24  ;;  %2456 = vmatpush3.msra.mxu1 %v3634_v49 }
 0x56b   :  { %1490 = vmatprep.subr.mxu0 %v3425_v61  ;;  %2457 = vmatprep.subr.mxu1 %v3910_v40 }
 0x56c   :  { %1491 = vmatpush1.msra.mxu0 %v3429_v36  ;;  %2458 = vmatpush3.msra.mxu1 %v3640_v54 }
 0x56d   :  { %1492 = vmatprep.subr.mxu0 %v3433_v42  ;;  %2459 = vmatprep.subr.mxu1 %v3910_v40 }
 0x56e   :  { %1493 = vmatpush1.msra.mxu0 %v3437_v26  ;;  %2460 = vmatpush3.msra.mxu1 %v3646_v60 }
 0x56f   :  { %1494 = vmatprep.subr.mxu0 %v3441_v30  ;;  %2461 = vmatprep.subr.mxu1 %v3910_v40 }
 0x570   :  { %1495 = vmatpush1.msra.mxu0 %v3445_v3  ;;  %2462 = vmatpush3.msra.mxu1 %v3652_v1 }
 0x571   :  { %1496 = vmatprep.subr.mxu0 %v3449_v44  ;;  %2463 = vmatprep.subr.mxu1 %v3910_v40 }
 0x572   :  { %1497 = vmatpush1.msra.mxu0 %v3453_v48  ;;  %2464 = vmatpush3.msra.mxu1 %v3658_v2 }
 0x573   :  { %1498 = vmatprep.subr.mxu0 %v3457_v20  ;;  %2465 = vmatprep.subr.mxu1 %v3910_v40 }
 0x574   :  { %1499 = vmatpush1.msra.mxu0 %v3461_v22  ;;  %2466 = vmatpush3.msra.mxu1 %v3664_v5 }
 0x575   :  { %1500 = vmatprep.subr.mxu0 %v3465_v32  ;;  %2467 = vmatprep.subr.mxu1 %v3910_v40 }
 0x576   :  { %1501 = vmatpush1.msra.mxu0 %v3469_v46  ;;  %2468 = vmatpush3.msra.mxu1 %v3670_v9 }
 0x577   :  { %1502 = vmatprep.subr.mxu0 %v3473_v28  ;;  %2469 = vmatprep.subr.mxu1 %v3910_v40 }
 0x578   :  { %1503 = vmatpush1.msra.mxu0 %v3477_v6  ;;  %2470 = vmatpush3.msra.mxu1 %v3676_v12 }
 0x579   :  { %1504 = vmatprep.subr.mxu0 %v3481_v10  ;;  %2471 = vmatprep.subr.mxu1 %v3910_v40 }
 0x57a   :  { %1505 = vmatpush1.msra.mxu0 %v3485_v11  ;;  %2472 = vmatpush3.msra.mxu1 %v3682_v14 }
 0x57b   :  { %1506 = vmatprep.subr.mxu0 %v3489_v17  ;;  %2473 = vmatprep.subr.mxu1 %v3910_v40 }
 0x57c   :  { %1507 = vmatpush1.msra.mxu0 %v3493_v19  ;;  %2474 = vmatpush3.msra.mxu1 %v3688_v16 }
 0x57d   :  { %1508 = vmatprep.subr.mxu0 %v3497_v21  ;;  %2475 = vmatprep.subr.mxu1 %v3910_v40 }
 0x57e   :  { %1509 = vmatpush1.msra.mxu0 %v3501_v23  ;;  %2476 = vmatpush3.msra.mxu1 %v3694_v18 }
 0x57f   :  { %1510 = vmatprep.subr.mxu0 %v3505_v25  ;;  %2477 = vmatprep.subr.mxu1 %v3910_v40 }
 0x580   :  { %1511 = vmatpush1.msra.mxu0 %v3509_v27  ;;  %2478 = vmatpush3.msra.mxu1 %v3700_v34 }
 0x581   :  { %1512 = vmatprep.subr.mxu0 %v3513_v29  ;;  %2479 = vmatprep.subr.mxu1 %v3910_v40 }
 0x582   :  { %1513 = vmatpush1.msra.mxu0 %v3517_v31  ;;  %2480 = vmatpush3.msra.mxu1 %v3706_v38 }
 0x583   :  { %1514 = vmatprep.subr.mxu0 %v3521_v33  ;;  %2481 = vmatprep.subr.mxu1 %v3910_v40 }
 0x584   :  { %1515 = vmatpush1.msra.mxu0 %v3938_v52  ;;  %2482 = vmatpush3.msra.mxu1 %v3712_v8 }
 0x585   :  { %1516 = vmatprep.subr.mxu0 %v3940_v56  ;;  %2483 = vmatprep.subr.mxu1 %v3910_v40  ;;  %v3951_v56 = vld [vmem:[#allocation45_spill] sm:$0xff] }
 0x586   :  { %1517 = vmatpush1.msra.mxu0 %v3941_v58  ;;  %1550 = vmatprep.mubr.f32.mxu0 %v3910_v40 }
 0x587   :  { %2484 = vmatpush3.msra.mxu1 %v3719_v13  ;;  %2485 = vmatprep.mubr.msk.f32.mxu1 %vm2869_vm0, %v3910_v40 }
 0x588   :  { %1654 = vmatprep.subr.mxu0 %v3943_v62  ;;  %2488 = vmatprep.subr.mxu1 %v3910_v40 }
 0x627   :  { %v1384_v15 = vpop.f32.mrf.mxu0  ;;  %v1455_v35 = vpop.f32.mrf.mxu1 }
 0x628   :  { %v1459_v39 = vadd.f32 %v1384_v15, %v3949_v37  ;;  %v1473_v62 = vadd.f32 %v3251_v59, %v1455_v35  ;;  %v3952_v59 = vld [vmem:[#allocation30_spill] sm:$0xff] }
 0x629   :  { %v2452_v43 = vpop.f32.mrf.mxu1  ;;  %v1386_v55 = vpop.f32.mrf.mxu0 }
 0x62a   :  { %v2008_v53 = vmul.f32 -1.442695, %v1459_v39  ;;  %v1466_v0 = vadd.f32 %v1386_v55, %v3950_v57  ;;  %v3964_v55 = vld [vmem:[#allocation41_spill] sm:$0xff] }
 0x62c   :  { %2630 = vpow2.f32 %v2008_v53  ;;  %v2009_v4 = vmul.f32 -1.442695, %v1466_v0 }
 0x62e   :  { %2632 = vpow2.f32 %v2009_v4 }
 0x639   :  { %v2631_v41 = vpop.eup %2630 }
 0x63a   :  { %v1463_v51 = vadd.f32 1.0, %v2631_v41 }
 0x63b   :  { %v2633_v50 = vpop.eup %2632 }
 0x63c   :  { %2634 = vrcp.f32 %v1463_v51  ;;  %v1470_v52 = vadd.f32 1.0, %v2633_v50  ;;  %v3953_v50 = vld [vmem:[#allocation31_spill] sm:$0xff] }
 0x63d   :  { %v1842_v51 = vld [vmem:[#allocation13 + $0x70] sm:$0xff] }
 0x649   :  { %v2635_v13 = vpop.eup %2634 }
 0x64a   :  { %v1474_v58 = vmul.f32 %v2635_v13, %v1473_v62  ;;  %v3965_v62 = vld [vmem:[#allocation42_spill] sm:$0xff] }
 0x64c   :  { %v1475_v8 = vadd.f32 %v1474_v58, %v3951_v56  ;;  %v1841_v56 = vld [vmem:[#allocation13 + $0x68] sm:$0xff]  ;;  %v1840_v58 = vld [vmem:[#allocation13 + $0x60] sm:$0xff] }
 0x64e   :  { %2636 = vtanh.f32 %v1475_v8  ;;  %v3963_v8 = vld [vmem:[#allocation26_spill] sm:$0xff] }
 0x64f   :  { %2638 = vrcp.f32 %v1470_v52  ;;  %v3960_v52 = vld [vmem:[#allocation49_spill] sm:$0xff] }
 0x65b   :  { %v2637_v15 = vpop.eup %2636 }
 0x65c   :  { %v1477_v37 = vsub.f32 %v3623_v45, %v2637_v15  ;;  %v2639_v39 = vpop.eup %2638 }
 0x65e   :  { %v1478_v43 = vmul.f32 %v2639_v39, %v1477_v37 }
 0x660   :  { %v3731_v53 = vadd.f32 %v2637_v15, %v1478_v43 }
 0x662   :  { %1551 = vmatmul.mubr.f32.vlgmr.msra.gmra.mxu0 %v3731_v53  ;;  %2486 = vmatmul.mubr.f32.vlgmr.msra.gmra.mxu1 %v3731_v53 }
 0x663   :  { %1655 = vmatpush1.msra.mxu0 %v3413_v63  ;;  %2489 = vmatpush3.msra.mxu1 %v3628_v47  ;;  %v3954_v63 = vld [vmem:[#allocation24_spill] sm:$0xff] }
 0x664   :  { %1656 = vmatprep.subr.mxu0 %v3417_v7  ;;  %2490 = vmatprep.subr.mxu1 %v3910_v40  ;;  %v3955_v7 = vld [vmem:[#allocation25_spill] sm:$0xff]  ;;  %v1839_v47 = vld [vmem:[#allocation13 + $0x58] sm:$0xff] }
 0x665   :  { %1657 = vmatpush1.msra.mxu0 %v3421_v24  ;;  %2491 = vmatpush3.msra.mxu1 %v3634_v49  ;;  %v3956_v24 = vld [vmem:[#allocation32_spill] sm:$0xff]  ;;  %v1838_v49 = vld [vmem:[#allocation13 + $0x50] sm:$0xff] }
 0x666   :  { %1658 = vmatprep.subr.mxu0 %v3425_v61  ;;  %2492 = vmatprep.subr.mxu1 %v3910_v40  ;;  %v1843_v61 = vld [vmem:[#allocation13 + $0x78] sm:$0xff] }
 0x667   :  { %1659 = vmatpush1.msra.mxu0 %v3429_v36  ;;  %2493 = vmatpush3.msra.mxu1 %v3640_v54  ;;  %v1837_v54 = vld [vmem:[#allocation13 + $0x48] sm:$0xff] }
 0x668   :  { %1660 = vmatprep.subr.mxu0 %v3433_v42  ;;  %2494 = vmatprep.subr.mxu1 %v3910_v40 }
 0x669   :  { %1661 = vmatpush1.msra.mxu0 %v3437_v26  ;;  %2495 = vmatpush3.msra.mxu1 %v3646_v60  ;;  %v3957_v26 = vld [vmem:[#allocation39_spill] sm:$0xff]  ;;  %v1836_v60 = vld [vmem:[#allocation13 + $0x40] sm:$0xff] }
 0x66a   :  { %1662 = vmatprep.subr.mxu0 %v3441_v30  ;;  %2496 = vmatprep.subr.mxu1 %v3910_v40 }
 0x66b   :  { %1663 = vmatpush1.msra.mxu0 %v3445_v3  ;;  %2497 = vmatpush3.msra.mxu1 %v3652_v1  ;;  %v1835_v1 = vld [vmem:[#allocation13 + $0x38] sm:$0xff] }
 0x66c   :  { %1664 = vmatprep.subr.mxu0 %v3449_v44  ;;  %2498 = vmatprep.subr.mxu1 %v3910_v40 }
 0x66d   :  { %1665 = vmatpush1.msra.mxu0 %v3453_v48  ;;  %2499 = vmatpush3.msra.mxu1 %v3658_v2  ;;  %v1834_v2 = vld [vmem:[#allocation13 + $0x30] sm:$0xff] }
 0x66e   :  { %1666 = vmatprep.subr.mxu0 %v3457_v20  ;;  %2500 = vmatprep.subr.mxu1 %v3910_v40  ;;  %v3958_v20 = vld [vmem:[#allocation40_spill] sm:$0xff] }
 0x66f   :  { %1667 = vmatpush1.msra.mxu0 %v3461_v22  ;;  %2501 = vmatpush3.msra.mxu1 %v3664_v5  ;;  %v1833_v5 = vld [vmem:[#allocation13 + $0x28] sm:$0xff] }
 0x670   :  { %1668 = vmatprep.subr.mxu0 %v3465_v32  ;;  %2502 = vmatprep.subr.mxu1 %v3910_v40 }
 0x671   :  { %1669 = vmatpush1.msra.mxu0 %v3469_v46  ;;  %2503 = vmatpush3.msra.mxu1 %v3670_v9  ;;  %v1832_v9 = vld [vmem:[#allocation13 + $0x20] sm:$0xff] }
 0x672   :  { %1670 = vmatprep.subr.mxu0 %v3473_v28  ;;  %2504 = vmatprep.subr.mxu1 %v3910_v40 }
 0x673   :  { %1671 = vmatpush1.msra.mxu0 %v3477_v6  ;;  %2505 = vmatpush3.msra.mxu1 %v3676_v12  ;;  %v1831_v12 = vld [vmem:[#allocation13 + $0x18] sm:$0xff] }
 0x674   :  { %1672 = vmatprep.subr.mxu0 %v3481_v10  ;;  %2506 = vmatprep.subr.mxu1 %v3910_v40 }
 0x675   :  { %1673 = vmatpush1.msra.mxu0 %v3485_v11  ;;  %2507 = vmatpush3.msra.mxu1 %v3682_v14  ;;  %v1830_v14 = vld [vmem:[#allocation13 + $0x10] sm:$0xff] }
 0x676   :  { %1674 = vmatprep.subr.mxu0 %v3489_v17  ;;  %2508 = vmatprep.subr.mxu1 %v3910_v40 }
 0x677   :  { %1675 = vmatpush1.msra.mxu0 %v3493_v19  ;;  %2509 = vmatpush3.msra.mxu1 %v3688_v16  ;;  %v3959_v19 = vld [vmem:[#allocation48_spill] sm:$0xff]  ;;  %v1829_v16 = vld [vmem:[#allocation13 + $0x8] sm:$0xff] }
 0x678   :  { %1676 = vmatprep.subr.mxu0 %v3497_v21  ;;  %2510 = vmatprep.subr.mxu1 %v3910_v40 }
 0x679   :  { %1677 = vmatpush1.msra.mxu0 %v3501_v23  ;;  %2511 = vmatpush3.msra.mxu1 %v3694_v18  ;;  %v1828_v18 = vld [vmem:[#allocation13] sm:$0xff] }
 0x67a   :  { %1678 = vmatprep.subr.mxu0 %v3505_v25  ;;  %2512 = vmatprep.subr.mxu1 %v3910_v40 }
 0x67b   :  { %1679 = vmatpush1.msra.mxu0 %v3509_v27  ;;  %2513 = vmatpush3.msra.mxu1 %v3700_v34  ;;  %v3961_v34 = vld [vmem:[#allocation23_spill] sm:$0xff] }
 0x67c   :  { %1680 = vmatprep.subr.mxu0 %v3513_v29  ;;  %2514 = vmatprep.subr.mxu1 %v3910_v40 }
 0x67d   :  { %1681 = vmatpush1.msra.mxu0 %v3517_v31  ;;  %2515 = vmatpush3.msra.mxu1 %v3706_v38  ;;  %v3962_v38 = vld [vmem:[#allocation29_spill] sm:$0xff] }
 0x67e   :  { %1682 = vmatprep.subr.mxu0 %v3521_v33  ;;  %2516 = vmatprep.subr.mxu1 %v3910_v40 }
 0x67f   :  { %1683 = vmatpush1.msra.mxu0 %v3952_v59  ;;  %2517 = vmatpush3.msra.mxu1 %v3953_v50 }
 0x680   :  { %1684 = vmatprep.subr.mxu0 %v3954_v63  ;;  %2518 = vmatprep.subr.mxu1 %v3910_v40 }
 0x681   :  { %1685 = vmatpush1.msra.mxu0 %v3955_v7  ;;  %1718 = vmatprep.mubr.f32.mxu0 %v3910_v40 }
 0x682   :  { %2519 = vmatpush3.msra.mxu1 %v3956_v24  ;;  %2520 = vmatprep.mubr.msk.f32.mxu1 %vm2869_vm0, %v3910_v40  ;;  %v3805_v40 = vld [vmem:[%s3843_s5] ss:$0 sm:$0xff] }
 0x683   :  { %2523 = vmatprep.subr.mxu0 %v1843_v61 }
 0x722   :  { %v1552_v36 = vpop.f32.mrf.mxu0  ;;  %v1623_v42 = vpop.f32.mrf.mxu1 }
 0x723   :  { %v1627_v30 = vadd.f32 %v1552_v36, %v3957_v26  ;;  %v1641_v10 = vadd.f32 %v3805_v40, %v1623_v42  ;;  %v3966_v26 = vld [vmem:[#allocation47_spill] sm:$0xff] }
 0x724   :  { %v2487_v3 = vpop.f32.mrf.mxu1  ;;  %v1554_v48 = vpop.f32.mrf.mxu0 }
 0x725   :  { %v2010_v44 = vmul.f32 -1.442695, %v1627_v30  ;;  %v1634_v22 = vadd.f32 %v1554_v48, %v3958_v20 }
 0x727   :  { %2640 = vpow2.f32 %v2010_v44  ;;  %v2011_v32 = vmul.f32 -1.442695, %v1634_v22 }
 0x729   :  { %2642 = vpow2.f32 %v2011_v32 }
 0x734   :  { %v2641_v46 = vpop.eup %2640 }
 0x735   :  { %v1631_v28 = vadd.f32 1.0, %v2641_v46 }
 0x736   :  { %v2643_v6 = vpop.eup %2642 }
 0x737   :  { %2644 = vrcp.f32 %v1631_v28  ;;  %v1638_v23 = vadd.f32 1.0, %v2643_v6 }
 0x744   :  { %v2645_v11 = vpop.eup %2644 }
 0x745   :  { %v1642_v17 = vmul.f32 %v2645_v11, %v1641_v10 }
 0x747   :  { %v1643_v21 = vadd.f32 %v1642_v17, %v3959_v19 }
 0x749   :  { %2646 = vtanh.f32 %v1643_v21 }
 0x74a   :  { %2648 = vrcp.f32 %v1638_v23 }
 0x756   :  { %v2647_v25 = vpop.eup %2646 }
 0x757   :  { %v1645_v27 = vsub.f32 %v3731_v53, %v2647_v25  ;;  %v2649_v29 = vpop.eup %2648 }
 0x759   :  { %v1646_v31 = vmul.f32 %v2649_v29, %v1645_v27 }
 0x75b   :  { %v3810_v33 = vadd.f32 %v2647_v25, %v1646_v31 }
 0x75d   :  { %1719 = vmatmul.mubr.f32.vlgmr.msra.gmra.mxu0 %v3810_v33  ;;  %2521 = vmatmul.mubr.f32.vlgmr.msra.gmra.mxu1 %v3810_v33 }
 0x75e   :  { %2524 = vmatpush3.msra.mxu0 %v1843_v61  ;;  %2555 = vmatprep.mubr.f32.mxu0 %v3960_v52 }
 0x75f   :  { %2525 = vmatprep.subr.mxu0 %v1842_v51 }
 0x760   :  { %2526 = vmatpush3.msra.mxu0 %v1842_v51 }
 0x761   :  { %2527 = vmatprep.subr.mxu0 %v1841_v56 }
 0x762   :  { %2528 = vmatpush3.msra.mxu0 %v1841_v56 }
 0x763   :  { %2529 = vmatprep.subr.mxu0 %v1840_v58 }
 0x764   :  { %2530 = vmatpush3.msra.mxu0 %v1840_v58 }
 0x765   :  { %2531 = vmatprep.subr.mxu0 %v1839_v47 }
 0x766   :  { %2532 = vmatpush3.msra.mxu0 %v1839_v47 }
 0x767   :  { %2533 = vmatprep.subr.mxu0 %v1838_v49 }
 0x768   :  { %2534 = vmatpush3.msra.mxu0 %v1838_v49 }
 0x769   :  { %2535 = vmatprep.subr.mxu0 %v1837_v54 }
 0x76a   :  { %2536 = vmatpush3.msra.mxu0 %v1837_v54 }
 0x76b   :  { %2537 = vmatprep.subr.mxu0 %v1836_v60 }
 0x76c   :  { %2538 = vmatpush3.msra.mxu0 %v1836_v60 }
 0x76d   :  { %2539 = vmatprep.subr.mxu0 %v1835_v1 }
 0x76e   :  { %2540 = vmatpush3.msra.mxu0 %v1835_v1 }
 0x76f   :  { %2541 = vmatprep.subr.mxu0 %v1834_v2 }
 0x770   :  { %2542 = vmatpush3.msra.mxu0 %v1834_v2 }
 0x771   :  { %2543 = vmatprep.subr.mxu0 %v1833_v5 }
 0x772   :  { %2544 = vmatpush3.msra.mxu0 %v1833_v5 }
 0x773   :  { %2545 = vmatprep.subr.mxu0 %v1832_v9 }
 0x774   :  { %2546 = vmatpush3.msra.mxu0 %v1832_v9 }
 0x775   :  { %2547 = vmatprep.subr.mxu0 %v1831_v12 }
 0x776   :  { %2548 = vmatpush3.msra.mxu0 %v1831_v12 }
 0x777   :  { %2549 = vmatprep.subr.mxu0 %v1830_v14 }
 0x778   :  { %2550 = vmatpush3.msra.mxu0 %v1830_v14 }
 0x779   :  { %2551 = vmatprep.subr.mxu0 %v1829_v16 }
 0x77a   :  { %2552 = vmatpush3.msra.mxu0 %v1829_v16 }
 0x77b   :  { %2553 = vmatprep.subr.mxu0 %v1828_v18 }
 0x77c   :  { %2554 = vmatpush3.msra.mxu0 %v1828_v18 }
 0x77d   :  { %2556 = vmatmul.mubr.f32.vlgmr.msra.gmra.mxu0 %v3961_v34 }
 0x77e   :  { %2558 = vmatprep.mubr.f32.mxu0 %v3962_v38 }
 0x781   :  { %2559 = vmatmul.mubr.f32.gmra.mxu0 %v3963_v8 }
 0x782   :  { %2561 = vmatprep.mubr.f32.mxu0 %v3623_v45  ;;  %v2014_v45 = vld [vmem:[%s3845_s7] ss:$0 sm:$0xff]  ;;  %s2870_s7 = smov [#allocation15]  }
 0x783   :  { %s1982_s18 = sshll.u32 %s2870_s7, 4  ;;  %s1983_s18 = int_to_ptr.vmem [resolvable:$true] %s1982_s18 }
 0x784   :  { %s2809_s19 = scalar_lea.vmem %s1983_s18, 128  ;;  %p2814_p12 = scmp.lt.s32.totalorder %s1983_s18, %s1983_s18 }
 0x785   :  { %2562 = vmatmul.mubr.f32.gmra.mxu0 %v3731_v53  ;;  %p2810_p11 = scmp.ne.s32.totalorder %s1983_s18, %s2809_s19  ;;  %p2815_p13 = scmp.lt.s32.totalorder %s2809_s19, %s2809_s19 }
 0x786   :  { %2564 = vmatprep.mubr.f32.mxu0 %v3810_v33 }
 0x787   :  { %p2816_p0 = por %p2815_p13, %p2814_p12 }
 0x789   :  { %p2817_p1 = pnand %p2816_p0, %p2810_p11 }
 0x81d   :  { %v1720_v13 = vpop.f32.mrf.mxu0  ;;  %v1791_v35 = vpop.f32.mrf.mxu1 }
 0x81e   :  { %v1795_v57 = vadd.f32 %v1720_v13, %v3964_v55  ;;  %v1809_v50 = vadd.f32 %v3805_v40, %v1791_v35 }
 0x81f   :  { %v2522_v0 = vpop.f32.mrf.mxu1  ;;  %v1722_v41 = vpop.f32.mrf.mxu0 }
 0x820   :  { %v2012_v4 = vmul.f32 -1.442695, %v1795_v57  ;;  %v1802_v15 = vadd.f32 %v1722_v41, %v3965_v62 }
 0x822   :  { %2650 = vpow2.f32 %v2012_v4  ;;  %v2013_v37 = vmul.f32 -1.442695, %v1802_v15 }
 0x824   :  { %2652 = vpow2.f32 %v2013_v37 }
 0x82f   :  { %v2651_v39 = vpop.eup %2650 }
 0x830   :  { %v1799_v43 = vadd.f32 1.0, %v2651_v39 }
 0x831   :  { %v2653_v59 = vpop.eup %2652 }
 0x832   :  { %2654 = vrcp.f32 %v1799_v43  ;;  %v1806_v3 = vadd.f32 1.0, %v2653_v59 }
 0x83d   :  { %v2557_v53 = vpop.f32.mrf.mxu0 }
 0x83e   :  { %v1923_v63 = vadd.f32 %v2557_v53, %v2014_v45 }
 0x83f   :  { %v2655_v7 = vpop.eup %2654  ;;  %v1917_v24 = vpop.f32.mrf.mxu0 }
 0x840   :  { %v1810_v61 = vmul.f32 %v2655_v7, %v1809_v50  ;;  %1957 = vst [vmem:[#allocation14 + $0x8] sm:$0xff] %v1923_v63  ;;  %v1918_v36 = vadd.f32 %v2014_v45, %v1917_v24 }
 0x841   :  { %v2560_v42 = vpop.f32.mrf.mxu0 }
 0x842   :  { %v1811_v30 = vadd.f32 %v1810_v61, %v3966_v26  ;;  %1956 = vst [vmem:[#allocation14] sm:$0xff] %v1918_v36  ;;  %v1933_v44 = vadd.f32 %v2560_v42, %v2014_v45 }
 0x843   :  { %v1927_v48 = vpop.f32.mrf.mxu0 }
 0x844   :  { %2656 = vtanh.f32 %v1811_v30  ;;  %1959 = vst [vmem:[#allocation14 + $0x18] sm:$0xff] %v1933_v44  ;;  %v1928_v20 = vadd.f32 %v2014_v45, %v1927_v48 }
 0x845   :  { %v2563_v22 = vpop.f32.mrf.mxu0  ;;  %2658 = vrcp.f32 %v1806_v3 }
 0x846   :  { %1958 = vst [vmem:[#allocation14 + $0x10] sm:$0xff] %v1928_v20  ;;  %v1943_v32 = vadd.f32 %v2563_v22, %v2014_v45 }
 0x847   :  { %v1937_v46 = vpop.f32.mrf.mxu0 }
 0x848   :  { %1961 = vst [vmem:[#allocation14 + $0x28] sm:$0xff] %v1943_v32  ;;  %v1938_v28 = vadd.f32 %v2014_v45, %v1937_v46 }
 0x84a   :  { %1960 = vst [vmem:[#allocation14 + $0x20] sm:$0xff] %v1938_v28 }
 0x851   :  { %v2657_v6 = vpop.eup %2656 }
 0x852   :  { %v1813_v40 = vsub.f32 %v3810_v33, %v2657_v6  ;;  %v2659_v10 = vpop.eup %2658 }
 0x854   :  { %v1814_v11 = vmul.f32 %v2659_v10, %v1813_v40 }
 0x856   :  { %v1815_v17 = vadd.f32 %v2657_v6, %v1814_v11 }
 0x858   :  { %2565 = vmatmul.mubr.f32.gmra.mxu0 %v1815_v17  ;;  %1819 = vst [vmem:[#allocation15] sm:$0xff] %v1815_v17 }
 0x859   :  { %2820 = shalt.err (!%p2817_p1)
}
 0x85a   :  { %1985 = dma.vmem_to_hbm [thread:$0]  %s1983_s18, 128, %s3847_s9, [#allocation16]  }
 0x85b   :  { %s2871_s22 = smov [#allocation14]  }
 0x85c   :  { %s1969_s1 = sshll.u32 %s2871_s22, 4  ;;  %s1970_s1 = int_to_ptr.vmem [resolvable:$true] %s1969_s1 }
 0x85d   :  { %s2829_s25 = scalar_lea.vmem %s1970_s1, 1024  ;;  %p2834_p3 = scmp.lt.s32.totalorder %s1970_s1, %s1970_s1 }
 0x85e   :  { %p2830_p2 = scmp.ne.s32.totalorder %s1970_s1, %s2829_s25  ;;  %p2835_p4 = scmp.lt.s32.totalorder %s2829_s25, %s2829_s25 }
 0x860   :  { %p2836_p5 = por %p2835_p4, %p2834_p3 }
 0x862   :  { %p2837_p6 = pnand %p2836_p5, %p2830_p2 }
 0x918   :  { %v2566_v19 = vpop.f32.mrf.mxu0 }
 0x919   :  { %v1953_v21 = vadd.f32 %v2566_v19, %v2014_v45 }
 0x91a   :  { %v1947_v23 = vpop.f32.mrf.mxu0 }
 0x91b   :  { %1963 = vst [vmem:[#allocation14 + $0x38] sm:$0xff] %v1953_v21  ;;  %v1948_v25 = vadd.f32 %v2014_v45, %v1947_v23 }
 0x91d   :  { %1962 = vst [vmem:[#allocation14 + $0x30] sm:$0xff] %v1948_v25 }
 0x91e   :  { %2840 = shalt.err (!%p2837_p6)
}
 0x91f   :  { %1975 = dma.vmem_to_hbm [thread:$0]  %s1970_s1, 1024, %s3846_s8, [#allocation7], %s2864_s23, %s2864_s23, %s2865_s24  }
 0x920   :  { %2855 = dma.done.wait [#allocation7], 1024  }
 0x921   :  { %2856 = vsyncadd [#allocation7], 4294966272 }
 0x922   :  { %2857 = dma.done.wait [#allocation16], 128  }
 0x923   :  { %2858 = vsyncadd [#allocation16], 4294967168 }
 0x924   :  { %1992 = vsyncpa [#allocation6], 1 }
 0x925   :  { %1993 = vsyncpa [#allocation9], 1 }
 0x926   :  { %1994 = vsyncpa [#allocation12], 1 }
 0x927   :  { %1995 = vsyncpa [#allocation7], 1 }
 0x928   :  { %1996 = vsyncpa [#allocation16], 1 }

</bundles_post_ra>
